<compile_context>
chip_gen: v6e
topology: v6e:2x2x1
jax: 0.10.0
libtpu: 0.0.40
codegen_flags: <defaults>
</compile_context>

<pallas_src>
import math

import jax
import jax.numpy as jnp
import numpy as np
from jax import lax
from jax.experimental import pallas as pl
from jax.experimental.pallas import tpu as pltpu

LN_EPS = 1e-6

PARAM_ORDER = [
    "ln1_w", "ln1_b", "wqkv", "bqkv", "wo", "bo",
    "ln2_w", "ln2_b", "w1", "b1", "w2", "b2",
]


# ---------------------------------------------------------------------------
# Fused Encoder kernel: grid = (batch, layer); residual stream resident in VMEM
# ---------------------------------------------------------------------------
def make_encoder_kernel(num_heads: int, hidden: int):
    head_dim = hidden // num_heads
    scale = 1.0 / math.sqrt(head_dim)
    inv_sqrt2 = 1.0 / math.sqrt(2.0)

    def layer_norm(v, w, b):  # w, b: (1, D), broadcast over (S, D)
        mu = jnp.mean(v, axis=-1, keepdims=True)
        var = jnp.mean(jnp.square(v - mu), axis=-1, keepdims=True)
        return (v - mu) * lax.rsqrt(var + LN_EPS) * w + b

    def gelu(v):  # exact (erf) GELU — matches nn.GELU default
        return 0.5 * v * (1.0 + lax.erf(v * inv_sqrt2))

    def bf16(v):
        return v.astype(jnp.bfloat16)

    def kernel(x_ref, ln1_w, ln1_b, wqkv, bqkv, wo, bo,
               ln2_w, ln2_b, w1, b1, w2, b2,
               o_ref, qkv_scr, attn_scr):
        layer = pl.program_id(1)

        # First layer for this batch element: load tokens into the resident
        # output block.  o_ref's block index does not depend on the layer axis,
        # so it stays in VMEM across all layers and is written back to HBM only
        # once per batch element (after the last layer).
        @pl.when(layer == 0)
        def _():
            o_ref[0] = x_ref[0]

        x = o_ref[0]  # (S, D) f32 residual stream

        # --- attention branch: ln1 -> MHA -> + residual ---------------------
        h = layer_norm(x, ln1_w[0], ln1_b[0])
        # Fused QKV projection: K = D, N = 3D (good MXU occupancy).  Parked in
        # VMEM scratch so the head loop below only loads small per-head slices.
        qkv_scr[...] = (jnp.dot(bf16(h), wqkv[0],
                                preferred_element_type=jnp.float32) + bqkv[0])

        # Per-head attention; each head's output goes straight into its lane
        # slot of attn_scr so the output projection is a single K=D matmul.
        # The unrolled loop is acceptable once the projection is hoisted out
        # (per review); head-batched dot_general needs a head-leading relayout
        # and is deferred to the flash-tiling TODO above.
        for hh in range(num_heads):
            sl = slice(hh * head_dim, (hh + 1) * head_dim)
            qh = bf16(qkv_scr[:, sl] * scale)  # softmax scale folded in once
            kh = bf16(qkv_scr[:, hidden + hh * head_dim:
                              hidden + (hh + 1) * head_dim])
            vh = bf16(qkv_scr[:, 2 * hidden + hh * head_dim:
                              2 * hidden + (hh + 1) * head_dim])
            # q @ k^T without materializing a transpose.
            s = lax.dot_general(qh, kh, (((1,), (1,)), ((), ())),
                                preferred_element_type=jnp.float32)
            s = s - jnp.max(s, axis=-1, keepdims=True)
            p = jnp.exp(s)
            p = p * pl.reciprocal(jnp.sum(p, axis=-1, keepdims=True), approx=True)
            attn_scr[:, sl] = jnp.dot(bf16(p), vh,
                                      preferred_element_type=jnp.float32)

        # Single output projection with K = D over the concatenated heads.
        attn = jnp.dot(bf16(attn_scr[...]), wo[0],
                       preferred_element_type=jnp.float32) + bo[0]
        # drop_path1 / layer_scale_1 are identity at inference.
        y1 = x + attn

        # --- MLP branch: ln2 -> Linear / GELU / Linear -> + residual --------
        h2 = layer_norm(y1, ln2_w[0], ln2_b[0])
        m = jnp.dot(bf16(h2), w1[0], preferred_element_type=jnp.float32) + b1[0]
        m = gelu(m)
        m = jnp.dot(bf16(m), w2[0], preferred_element_type=jnp.float32) + b2[0]
        # drop_path2 / layer_scale_2 are identity at inference.
        o_ref[0] = y1 + m

    return kernel


# ---------------------------------------------------------------------------
# Wrapper: stack per-layer params on a leading L axis and launch one pallas_call
# ---------------------------------------------------------------------------
def stack_layer_params(layer_params):
    """Stack per-layer params -> leading L axis; vectors become (L, 1, width)
    so the last two block dims always equal the full array dims ((8,128) rule)."""
    stacked = {}
    for name in PARAM_ORDER:
        w = jnp.stack([p[name] for p in layer_params], axis=0)
        if w.ndim == 2:
            w = w[:, None, :]
        stacked[name] = w
    return stacked


def encoder_forward(x, stacked, num_heads):
    b_, s_, d_ = x.shape
    weights = [stacked[name] for name in PARAM_ORDER]
    n_layers = weights[0].shape[0]
    kernel = make_encoder_kernel(num_heads, d_)

    # ---- generation-aware VMEM budget (v7x: 64 MiB, v5e/v6e: 128 MiB) ------
    try:
        vmem_cap = int(getattr(pltpu.get_tpu_info(), "vmem_capacity_bytes"))
    except Exception:
        vmem_cap = 64 * 1024 * 1024  # conservative default: v7x per-core VMEM
    vmem_cap = max(vmem_cap, 32 * 1024 * 1024)

    per_layer_w = sum(int(np.prod(w.shape[1:])) * w.dtype.itemsize for w in weights)
    act_bytes = 2 * 2 * s_ * d_ * 4            # in + out blocks, double-buffered
    scratch_bytes = s_ * 3 * d_ * 4 + s_ * d_ * 4
    need = 2 * per_layer_w + act_bytes + scratch_bytes + (2 << 20)
    # Double-buffered weights give cross-layer prefetch; drop to single buffer
    # only when one layer's weights would not fit twice (large D on v7x).
    single_buffer_weights = need > int(0.6 * vmem_cap)
    if single_buffer_weights:
        need = per_layer_w + act_bytes + scratch_bytes + (2 << 20)
    vmem_limit = int(min(0.7 * vmem_cap, max(2 * need, 32 << 20)))

    w_index_map = lambda b, l: (l, 0, 0)
    if single_buffer_weights:
        def w_spec(w):
            return pl.BlockSpec((1,) + w.shape[1:], w_index_map,
                                pipeline_mode=pl.Buffered(1))
    else:
        def w_spec(w):
            return pl.BlockSpec((1,) + w.shape[1:], w_index_map)

    in_specs = [pl.BlockSpec((1, s_, d_), lambda b, l: (b, 0, 0))]
    in_specs += [w_spec(w) for w in weights]

    return pl.pallas_call(
        kernel,
        out_shape=jax.ShapeDtypeStruct((b_, s_, d_), jnp.float32),
        grid=(b_, n_layers),
        in_specs=in_specs,
        out_specs=pl.BlockSpec((1, s_, d_), lambda b, l: (b, 0, 0)),
        scratch_shapes=[
            pltpu.VMEM((s_, 3 * d_), jnp.float32),  # fused QKV projection
            pltpu.VMEM((s_, d_), jnp.float32),      # concatenated head outputs
        ],
        compiler_params=pltpu.CompilerParams(
            dimension_semantics=("parallel", "arbitrary"),
            vmem_limit_bytes=vmem_limit,
        ),
    )(x, *weights)


encoder_forward_jit = jax.jit(encoder_forward, static_argnums=(2,))


# ---------------------------------------------------------------------------
# Pure-JAX f32 reference (same math, full precision) for the correctness check
# ---------------------------------------------------------------------------
def ref_block(x, p, num_heads):
    hidden = x.shape[-1]
    head_dim = hidden // num_heads
    scale = 1.0 / math.sqrt(head_dim)
    f32 = lambda a: a.astype(jnp.float32)

    def ln(v, w, b):
        mu = jnp.mean(v, axis=-1, keepdims=True)
        var = jnp.mean(jnp.square(v - mu), axis=-1, keepdims=True)
        return (v - mu) * lax.rsqrt(var + LN_EPS) * w + b

    h = ln(x, p["ln1_w"], p["ln1_b"])
    qkv = h @ f32(p["wqkv"]) + p["bqkv"]
    q, k, v = jnp.split(qkv, 3, axis=-1)
    B, S, _ = x.shape
    q = q.reshape(B, S, num_heads, head_dim).transpose(0, 2, 1, 3) * scale
    k = k.reshape(B, S, num_heads, head_dim).transpose(0, 2, 1, 3)
    v = v.reshape(B, S, num_heads, head_dim).transpose(0, 2, 1, 3)
    s = jnp.einsum("bhqd,bhkd->bhqk", q, k)
    pmat = jax.nn.softmax(s, axis=-1)
    a = jnp.einsum("bhqk,bhkd->bhqd", pmat, v)
    a = a.transpose(0, 2, 1, 3).reshape(B, S, hidden)
    a = a @ f32(p["wo"]) + p["bo"]
    y1 = x + a
    h2 = ln(y1, p["ln2_w"], p["ln2_b"])
    m = h2 @ f32(p["w1"]) + p["b1"]
    m = 0.5 * m * (1.0 + lax.erf(m / math.sqrt(2.0)))
    m = m @ f32(p["w2"]) + p["b2"]
    return y1 + m


def ref_encoder(x, layer_params, num_heads):
    for p in layer_params:
        x = ref_block(x, p, num_heads)
    return x


# ---------------------------------------------------------------------------
# Deterministic parameter init (shapes follow EncoderBlock.__init__)
# ---------------------------------------------------------------------------
def init_block_params(key, hidden, mlp_dim):
    ks = jax.random.split(key, 8)
    s = 0.02
    bf = jnp.bfloat16
    return {
        "ln1_w": jnp.ones((hidden,), jnp.float32),
        "ln1_b": jnp.zeros((hidden,), jnp.float32),
        "wqkv": (s * jax.random.normal(ks[0], (hidden, 3 * hidden), jnp.float32)).astype(bf),
        "bqkv": s * jax.random.normal(ks[1], (3 * hidden,), jnp.float32),
        "wo": (s * jax.random.normal(ks[2], (hidden, hidden), jnp.float32)).astype(bf),
        "bo": s * jax.random.normal(ks[3], (hidden,), jnp.float32),
        "ln2_w": jnp.ones((hidden,), jnp.float32),
        "ln2_b": jnp.zeros((hidden,), jnp.float32),
        "w1": (s * jax.random.normal(ks[4], (hidden, mlp_dim), jnp.float32)).astype(bf),
        "b1": s * jax.random.normal(ks[5], (mlp_dim,), jnp.float32),
        "w2": (s * jax.random.normal(ks[6], (mlp_dim, hidden), jnp.float32)).astype(bf),
        "b2": s * jax.random.normal(ks[7], (hidden,), jnp.float32),
    }


if __name__ == "__main__":
    # Small Encoder config: num_layers=2, num_heads=4, hidden_dim=32, mlp_dim=64,
    # dropout=0.0, attention_dropout=0.0, dpr=[0.0, 0.0], pre_norm=False.
    num_layers, num_heads, hidden_dim, mlp_dim = 2, 4, 32, 64
    B, S = 2, 8

    key = jax.random.PRNGKey(0)
    kx, *kls = jax.random.split(key, 1 + num_layers)
    x = jax.random.normal(kx, (B, S, hidden_dim), jnp.float32)
    layer_params = [init_block_params(k, hidden_dim, mlp_dim) for k in kls]
    stacked = stack_layer_params(layer_params)

    # f32 reference (kernel uses bf16 matmuls + approx reciprocal -> relaxed tol).
    ref = jax.block_until_ready(ref_encoder(x, layer_params, num_heads))

    out = jax.block_until_ready(encoder_forward_jit(x, stacked, num_heads))

    np.testing.assert_allclose(np.asarray(out), np.asarray(ref), rtol=5e-2, atol=5e-2)

    # TODO(synk): training-time Dropout / StochasticDepth not implemented (identity at eval).
    print("KERNEL_OK")
</pallas_src>

<mosaic_0001>
module attributes {stable_mosaic.version = 11 : i64} {
  func.func @kernel(%arg0: i32, %arg1: i32, %arg2: memref<1x8x32xf32, #tpu.memory_space<vmem>>, %arg3: memref<1x1x32xf32, #tpu.memory_space<vmem>>, %arg4: memref<1x1x32xf32, #tpu.memory_space<vmem>>, %arg5: memref<1x32x96xbf16, #tpu.memory_space<vmem>>, %arg6: memref<1x1x96xf32, #tpu.memory_space<vmem>>, %arg7: memref<1x32x32xbf16, #tpu.memory_space<vmem>>, %arg8: memref<1x1x32xf32, #tpu.memory_space<vmem>>, %arg9: memref<1x1x32xf32, #tpu.memory_space<vmem>>, %arg10: memref<1x1x32xf32, #tpu.memory_space<vmem>>, %arg11: memref<1x32x64xbf16, #tpu.memory_space<vmem>>, %arg12: memref<1x1x64xf32, #tpu.memory_space<vmem>>, %arg13: memref<1x64x32xbf16, #tpu.memory_space<vmem>>, %arg14: memref<1x1x32xf32, #tpu.memory_space<vmem>>, %arg15: memref<1x8x32xf32, #tpu.memory_space<vmem>>, %arg16: memref<8x96xf32, #tpu.memory_space<vmem>>, %arg17: memref<8x32xf32, #tpu.memory_space<vmem>>) attributes {dimension_semantics = [#tpu.dimension_semantics<parallel>, #tpu.dimension_semantics<arbitrary>], iteration_bounds = array<i64: 2, 2>, scalar_prefetch = 0 : i64, scratch_operands = 2 : i64, tpu.core_type = #tpu.core_type<tc>, window_params = [{transform_indices = @transform_0, window_bounds = array<i64: 1, 8, 32>}, {transform_indices = @transform_1, window_bounds = array<i64: 1, 1, 32>}, {transform_indices = @transform_2, window_bounds = array<i64: 1, 1, 32>}, {transform_indices = @transform_3, window_bounds = array<i64: 1, 32, 96>}, {transform_indices = @transform_4, window_bounds = array<i64: 1, 1, 96>}, {transform_indices = @transform_5, window_bounds = array<i64: 1, 32, 32>}, {transform_indices = @transform_6, window_bounds = array<i64: 1, 1, 32>}, {transform_indices = @transform_7, window_bounds = array<i64: 1, 1, 32>}, {transform_indices = @transform_8, window_bounds = array<i64: 1, 1, 32>}, {transform_indices = @transform_9, window_bounds = array<i64: 1, 32, 64>}, {transform_indices = @transform_10, window_bounds = array<i64: 1, 1, 64>}, {transform_indices = @transform_11, window_bounds = array<i64: 1, 64, 32>}, {transform_indices = @transform_12, window_bounds = array<i64: 1, 1, 32>}, {transform_indices = @transform_13, window_bounds = array<i64: 1, 8, 32>}]} {
    %c0_i32 = arith.constant 0 : i32
    %0 = arith.cmpi eq, %arg1, %c0_i32 : i32
    %1 = arith.extui %0 : i1 to i32
    %c0_i32_0 = arith.constant 0 : i32
    %2 = arith.cmpi ne, %1, %c0_i32_0 : i32
    scf.if %2 {
      %c0_103 = arith.constant 0 : index
      %c0_104 = arith.constant 0 : index
      %c0_105 = arith.constant 0 : index
      %192 = vector.load %arg2[%c0_103, %c0_104, %c0_105] : memref<1x8x32xf32, #tpu.memory_space<vmem>>, vector<1x8x32xf32>
      %193 = vector.shape_cast %192 : vector<1x8x32xf32> to vector<8x32xf32>
      %c0_106 = arith.constant 0 : index
      %c0_107 = arith.constant 0 : index
      %c0_108 = arith.constant 0 : index
      %194 = vector.load %arg15[%c0_106, %c0_107, %c0_108] : memref<1x8x32xf32, #tpu.memory_space<vmem>>, vector<1x8x32xf32>
      %195 = vector.shape_cast %194 : vector<1x8x32xf32> to vector<8x32xf32>
      %196 = vector.shape_cast %193 : vector<8x32xf32> to vector<1x8x32xf32>
      tpu.vector_store %arg15[%c0_106, %c0_107, %c0_108], %196 {strides = array<i32>} : memref<1x8x32xf32, #tpu.memory_space<vmem>>, vector<1x8x32xf32>,
    } else {
    }
    %c0 = arith.constant 0 : index
    %c0_1 = arith.constant 0 : index
    %c0_2 = arith.constant 0 : index
    %3 = vector.load %arg15[%c0, %c0_1, %c0_2] : memref<1x8x32xf32, #tpu.memory_space<vmem>>, vector<1x8x32xf32>
    %4 = vector.shape_cast %3 : vector<1x8x32xf32> to vector<8x32xf32>
    %c0_3 = arith.constant 0 : index
    %c0_4 = arith.constant 0 : index
    %c0_5 = arith.constant 0 : index
    %5 = vector.load %arg3[%c0_3, %c0_4, %c0_5] : memref<1x1x32xf32, #tpu.memory_space<vmem>>, vector<1x1x32xf32>
    %6 = vector.shape_cast %5 : vector<1x1x32xf32> to vector<1x32xf32>
    %c0_6 = arith.constant 0 : index
    %c0_7 = arith.constant 0 : index
    %c0_8 = arith.constant 0 : index
    %7 = vector.load %arg4[%c0_6, %c0_7, %c0_8] : memref<1x1x32xf32, #tpu.memory_space<vmem>>, vector<1x1x32xf32>
    %8 = vector.shape_cast %7 : vector<1x1x32xf32> to vector<1x32xf32>
    %cst = arith.constant dense<0.000000e+00> : vector<8xf32>
    %9 = vector.multi_reduction <add>, %4, %cst [1] : vector<8x32xf32> to vector<8xf32>
    %10 = vector.shape_cast %9 : vector<8xf32> to vector<8x1xf32>
    %cst_9 = arith.constant 3.200000e+01 : f32
    %11 = vector.broadcast %cst_9 : f32 to vector<8x1xf32>
    %12 = arith.divf %10, %11 : vector<8x1xf32>
    %13 = vector.broadcast %12 : vector<8x1xf32> to vector<8x32xf32>
    %14 = arith.subf %4, %13 : vector<8x32xf32>
    %15 = arith.mulf %14, %14 : vector<8x32xf32>
    %cst_10 = arith.constant dense<0.000000e+00> : vector<8xf32>
    %16 = vector.multi_reduction <add>, %15, %cst_10 [1] : vector<8x32xf32> to vector<8xf32>
    %17 = vector.shape_cast %16 : vector<8xf32> to vector<8x1xf32>
    %cst_11 = arith.constant 3.200000e+01 : f32
    %18 = vector.broadcast %cst_11 : f32 to vector<8x1xf32>
    %19 = arith.divf %17, %18 : vector<8x1xf32>
    %20 = vector.broadcast %12 : vector<8x1xf32> to vector<8x32xf32>
    %21 = arith.subf %4, %20 : vector<8x32xf32>
    %cst_12 = arith.constant 9.99999997E-7 : f32
    %22 = vector.broadcast %cst_12 : f32 to vector<8x1xf32>
    %23 = arith.addf %19, %22 : vector<8x1xf32>
    %24 = math.rsqrt %23 : vector<8x1xf32>
    %25 = vector.broadcast %24 : vector<8x1xf32> to vector<8x32xf32>
    %26 = arith.mulf %21, %25 : vector<8x32xf32>
    %27 = vector.broadcast %6 : vector<1x32xf32> to vector<8x32xf32>
    %28 = arith.mulf %26, %27 : vector<8x32xf32>
    %29 = vector.broadcast %8 : vector<1x32xf32> to vector<8x32xf32>
    %30 = arith.addf %28, %29 : vector<8x32xf32>
    %31 = arith.truncf %30 : vector<8x32xf32> to vector<8x32xbf16>
    %c0_13 = arith.constant 0 : index
    %c0_14 = arith.constant 0 : index
    %c0_15 = arith.constant 0 : index
    %32 = vector.load %arg5[%c0_13, %c0_14, %c0_15] : memref<1x32x96xbf16, #tpu.memory_space<vmem>>, vector<1x32x96xbf16>
    %33 = vector.shape_cast %32 : vector<1x32x96xbf16> to vector<32x96xbf16>
    %cst_16 = arith.constant dense<0.000000e+00> : vector<8x96xf32>
    %34 = tpu.matmul %31, %33, %cst_16 {dimension_numbers = #tpu.dot_dimension_numbers<[1], [0], [0], [1], [0, 0, 1, 1], [], []>} : vector<8x32xbf16>, vector<32x96xbf16>, vector<8x96xf32> -> vector<8x96xf32>
    %c0_17 = arith.constant 0 : index
    %c0_18 = arith.constant 0 : index
    %c0_19 = arith.constant 0 : index
    %35 = vector.load %arg6[%c0_17, %c0_18, %c0_19] : memref<1x1x96xf32, #tpu.memory_space<vmem>>, vector<1x1x96xf32>
    %36 = vector.shape_cast %35 : vector<1x1x96xf32> to vector<1x96xf32>
    %37 = vector.broadcast %36 : vector<1x96xf32> to vector<8x96xf32>
    %38 = arith.addf %34, %37 : vector<8x96xf32>
    %c0_20 = arith.constant 0 : index
    %c0_21 = arith.constant 0 : index
    %39 = vector.load %arg16[%c0_20, %c0_21] : memref<8x96xf32, #tpu.memory_space<vmem>>, vector<8x96xf32>
    tpu.vector_store %arg16[%c0_20, %c0_21], %38 {strides = array<i32>} : memref<8x96xf32, #tpu.memory_space<vmem>>, vector<8x96xf32>,
    %c0_22 = arith.constant 0 : index
    %c0_23 = arith.constant 0 : index
    %40 = vector.load %arg16[%c0_22, %c0_23] : memref<8x96xf32, #tpu.memory_space<vmem>>, vector<8x8xf32>
    %cst_24 = arith.constant 0.353553385 : f32
    %41 = vector.broadcast %cst_24 : f32 to vector<8x8xf32>
    %42 = arith.mulf %40, %41 : vector<8x8xf32>
    %43 = arith.truncf %42 : vector<8x8xf32> to vector<8x8xbf16>
    %c0_25 = arith.constant 0 : index
    %c32 = arith.constant 32 : index
    %44 = vector.load %arg16[%c0_25, %c32] : memref<8x96xf32, #tpu.memory_space<vmem>>, vector<8x8xf32>
    %45 = arith.truncf %44 : vector<8x8xf32> to vector<8x8xbf16>
    %c0_26 = arith.constant 0 : index
    %c64 = arith.constant 64 : index
    %46 = vector.load %arg16[%c0_26, %c64] : memref<8x96xf32, #tpu.memory_space<vmem>>, vector<8x8xf32>
    %47 = arith.truncf %46 : vector<8x8xf32> to vector<8x8xbf16>
    %cst_27 = arith.constant dense<0.000000e+00> : vector<8x8xf32>
    %48 = tpu.matmul %43, %45, %cst_27 {dimension_numbers = #tpu.dot_dimension_numbers<[1], [1], [0], [0], [0, 0, 1, 0], [], []>} : vector<8x8xbf16>, vector<8x8xbf16>, vector<8x8xf32> -> vector<8x8xf32>
    %cst_28 = arith.constant dense<0xFF800000> : vector<8xf32>
    %49 = vector.multi_reduction <maximumf>, %48, %cst_28 [1] : vector<8x8xf32> to vector<8xf32>
    %50 = vector.shape_cast %49 : vector<8xf32> to vector<8x1xf32>
    %51 = vector.broadcast %50 : vector<8x1xf32> to vector<8x8xf32>
    %52 = arith.subf %48, %51 : vector<8x8xf32>
    %53 = math.exp %52 : vector<8x8xf32>
    %cst_29 = arith.constant dense<0.000000e+00> : vector<8xf32>
    %54 = vector.multi_reduction <add>, %53, %cst_29 [1] : vector<8x8xf32> to vector<8xf32>
    %55 = vector.shape_cast %54 : vector<8xf32> to vector<8x1xf32>
    %56 = tpu.reciprocal %55 {approx = true} : vector<8x1xf32> -> vector<8x1xf32>
    %57 = vector.broadcast %56 : vector<8x1xf32> to vector<8x8xf32>
    %58 = arith.mulf %53, %57 : vector<8x8xf32>
    %59 = arith.truncf %58 : vector<8x8xf32> to vector<8x8xbf16>
    %cst_30 = arith.constant dense<0.000000e+00> : vector<8x8xf32>
    %60 = tpu.matmul %59, %47, %cst_30 {dimension_numbers = #tpu.dot_dimension_numbers<[1], [0], [0], [1], [0, 0, 1, 1], [], []>} : vector<8x8xbf16>, vector<8x8xbf16>, vector<8x8xf32> -> vector<8x8xf32>
    %c0_31 = arith.constant 0 : index
    %c0_32 = arith.constant 0 : index
    %61 = vector.load %arg17[%c0_31, %c0_32] : memref<8x32xf32, #tpu.memory_space<vmem>>, vector<8x8xf32>
    tpu.vector_store %arg17[%c0_31, %c0_32], %60 {strides = array<i32>} : memref<8x32xf32, #tpu.memory_space<vmem>>, vector<8x8xf32>,
    %c0_33 = arith.constant 0 : index
    %c8 = arith.constant 8 : index
    %62 = vector.load %arg16[%c0_33, %c8] : memref<8x96xf32, #tpu.memory_space<vmem>>, vector<8x8xf32>
    %cst_34 = arith.constant 0.353553385 : f32
    %63 = vector.broadcast %cst_34 : f32 to vector<8x8xf32>
    %64 = arith.mulf %62, %63 : vector<8x8xf32>
    %65 = arith.truncf %64 : vector<8x8xf32> to vector<8x8xbf16>
    %c0_35 = arith.constant 0 : index
    %c40 = arith.constant 40 : index
    %66 = vector.load %arg16[%c0_35, %c40] : memref<8x96xf32, #tpu.memory_space<vmem>>, vector<8x8xf32>
    %67 = arith.truncf %66 : vector<8x8xf32> to vector<8x8xbf16>
    %c0_36 = arith.constant 0 : index
    %c72 = arith.constant 72 : index
    %68 = vector.load %arg16[%c0_36, %c72] : memref<8x96xf32, #tpu.memory_space<vmem>>, vector<8x8xf32>
    %69 = arith.truncf %68 : vector<8x8xf32> to vector<8x8xbf16>
    %cst_37 = arith.constant dense<0.000000e+00> : vector<8x8xf32>
    %70 = tpu.matmul %65, %67, %cst_37 {dimension_numbers = #tpu.dot_dimension_numbers<[1], [1], [0], [0], [0, 0, 1, 0], [], []>} : vector<8x8xbf16>, vector<8x8xbf16>, vector<8x8xf32> -> vector<8x8xf32>
    %cst_38 = arith.constant dense<0xFF800000> : vector<8xf32>
    %71 = vector.multi_reduction <maximumf>, %70, %cst_38 [1] : vector<8x8xf32> to vector<8xf32>
    %72 = vector.shape_cast %71 : vector<8xf32> to vector<8x1xf32>
    %73 = vector.broadcast %72 : vector<8x1xf32> to vector<8x8xf32>
    %74 = arith.subf %70, %73 : vector<8x8xf32>
    %75 = math.exp %74 : vector<8x8xf32>
    %cst_39 = arith.constant dense<0.000000e+00> : vector<8xf32>
    %76 = vector.multi_reduction <add>, %75, %cst_39 [1] : vector<8x8xf32> to vector<8xf32>
    %77 = vector.shape_cast %76 : vector<8xf32> to vector<8x1xf32>
    %78 = tpu.reciprocal %77 {approx = true} : vector<8x1xf32> -> vector<8x1xf32>
    %79 = vector.broadcast %78 : vector<8x1xf32> to vector<8x8xf32>
    %80 = arith.mulf %75, %79 : vector<8x8xf32>
    %81 = arith.truncf %80 : vector<8x8xf32> to vector<8x8xbf16>
    %cst_40 = arith.constant dense<0.000000e+00> : vector<8x8xf32>
    %82 = tpu.matmul %81, %69, %cst_40 {dimension_numbers = #tpu.dot_dimension_numbers<[1], [0], [0], [1], [0, 0, 1, 1], [], []>} : vector<8x8xbf16>, vector<8x8xbf16>, vector<8x8xf32> -> vector<8x8xf32>
    %c0_41 = arith.constant 0 : index
    %c8_42 = arith.constant 8 : index
    %83 = vector.load %arg17[%c0_41, %c8_42] : memref<8x32xf32, #tpu.memory_space<vmem>>, vector<8x8xf32>
    tpu.vector_store %arg17[%c0_41, %c8_42], %82 {strides = array<i32>} : memref<8x32xf32, #tpu.memory_space<vmem>>, vector<8x8xf32>,
    %c0_43 = arith.constant 0 : index
    %c16 = arith.constant 16 : index
    %84 = vector.load %arg16[%c0_43, %c16] : memref<8x96xf32, #tpu.memory_space<vmem>>, vector<8x8xf32>
    %cst_44 = arith.constant 0.353553385 : f32
    %85 = vector.broadcast %cst_44 : f32 to vector<8x8xf32>
    %86 = arith.mulf %84, %85 : vector<8x8xf32>
    %87 = arith.truncf %86 : vector<8x8xf32> to vector<8x8xbf16>
    %c0_45 = arith.constant 0 : index
    %c48 = arith.constant 48 : index
    %88 = vector.load %arg16[%c0_45, %c48] : memref<8x96xf32, #tpu.memory_space<vmem>>, vector<8x8xf32>
    %89 = arith.truncf %88 : vector<8x8xf32> to vector<8x8xbf16>
    %c0_46 = arith.constant 0 : index
    %c80 = arith.constant 80 : index
    %90 = vector.load %arg16[%c0_46, %c80] : memref<8x96xf32, #tpu.memory_space<vmem>>, vector<8x8xf32>
    %91 = arith.truncf %90 : vector<8x8xf32> to vector<8x8xbf16>
    %cst_47 = arith.constant dense<0.000000e+00> : vector<8x8xf32>
    %92 = tpu.matmul %87, %89, %cst_47 {dimension_numbers = #tpu.dot_dimension_numbers<[1], [1], [0], [0], [0, 0, 1, 0], [], []>} : vector<8x8xbf16>, vector<8x8xbf16>, vector<8x8xf32> -> vector<8x8xf32>
    %cst_48 = arith.constant dense<0xFF800000> : vector<8xf32>
    %93 = vector.multi_reduction <maximumf>, %92, %cst_48 [1] : vector<8x8xf32> to vector<8xf32>
    %94 = vector.shape_cast %93 : vector<8xf32> to vector<8x1xf32>
    %95 = vector.broadcast %94 : vector<8x1xf32> to vector<8x8xf32>
    %96 = arith.subf %92, %95 : vector<8x8xf32>
    %97 = math.exp %96 : vector<8x8xf32>
    %cst_49 = arith.constant dense<0.000000e+00> : vector<8xf32>
    %98 = vector.multi_reduction <add>, %97, %cst_49 [1] : vector<8x8xf32> to vector<8xf32>
    %99 = vector.shape_cast %98 : vector<8xf32> to vector<8x1xf32>
    %100 = tpu.reciprocal %99 {approx = true} : vector<8x1xf32> -> vector<8x1xf32>
    %101 = vector.broadcast %100 : vector<8x1xf32> to vector<8x8xf32>
    %102 = arith.mulf %97, %101 : vector<8x8xf32>
    %103 = arith.truncf %102 : vector<8x8xf32> to vector<8x8xbf16>
    %cst_50 = arith.constant dense<0.000000e+00> : vector<8x8xf32>
    %104 = tpu.matmul %103, %91, %cst_50 {dimension_numbers = #tpu.dot_dimension_numbers<[1], [0], [0], [1], [0, 0, 1, 1], [], []>} : vector<8x8xbf16>, vector<8x8xbf16>, vector<8x8xf32> -> vector<8x8xf32>
    %c0_51 = arith.constant 0 : index
    %c16_52 = arith.constant 16 : index
    %105 = vector.load %arg17[%c0_51, %c16_52] : memref<8x32xf32, #tpu.memory_space<vmem>>, vector<8x8xf32>
    tpu.vector_store %arg17[%c0_51, %c16_52], %104 {strides = array<i32>} : memref<8x32xf32, #tpu.memory_space<vmem>>, vector<8x8xf32>,
    %c0_53 = arith.constant 0 : index
    %c24 = arith.constant 24 : index
    %106 = vector.load %arg16[%c0_53, %c24] : memref<8x96xf32, #tpu.memory_space<vmem>>, vector<8x8xf32>
    %cst_54 = arith.constant 0.353553385 : f32
    %107 = vector.broadcast %cst_54 : f32 to vector<8x8xf32>
    %108 = arith.mulf %106, %107 : vector<8x8xf32>
    %109 = arith.truncf %108 : vector<8x8xf32> to vector<8x8xbf16>
    %c0_55 = arith.constant 0 : index
    %c56 = arith.constant 56 : index
    %110 = vector.load %arg16[%c0_55, %c56] : memref<8x96xf32, #tpu.memory_space<vmem>>, vector<8x8xf32>
    %111 = arith.truncf %110 : vector<8x8xf32> to vector<8x8xbf16>
    %c0_56 = arith.constant 0 : index
    %c88 = arith.constant 88 : index
    %112 = vector.load %arg16[%c0_56, %c88] : memref<8x96xf32, #tpu.memory_space<vmem>>, vector<8x8xf32>
    %113 = arith.truncf %112 : vector<8x8xf32> to vector<8x8xbf16>
    %cst_57 = arith.constant dense<0.000000e+00> : vector<8x8xf32>
    %114 = tpu.matmul %109, %111, %cst_57 {dimension_numbers = #tpu.dot_dimension_numbers<[1], [1], [0], [0], [0, 0, 1, 0], [], []>} : vector<8x8xbf16>, vector<8x8xbf16>, vector<8x8xf32> -> vector<8x8xf32>
    %cst_58 = arith.constant dense<0xFF800000> : vector<8xf32>
    %115 = vector.multi_reduction <maximumf>, %114, %cst_58 [1] : vector<8x8xf32> to vector<8xf32>
    %116 = vector.shape_cast %115 : vector<8xf32> to vector<8x1xf32>
    %117 = vector.broadcast %116 : vector<8x1xf32> to vector<8x8xf32>
    %118 = arith.subf %114, %117 : vector<8x8xf32>
    %119 = math.exp %118 : vector<8x8xf32>
    %cst_59 = arith.constant dense<0.000000e+00> : vector<8xf32>
    %120 = vector.multi_reduction <add>, %119, %cst_59 [1] : vector<8x8xf32> to vector<8xf32>
    %121 = vector.shape_cast %120 : vector<8xf32> to vector<8x1xf32>
    %122 = tpu.reciprocal %121 {approx = true} : vector<8x1xf32> -> vector<8x1xf32>
    %123 = vector.broadcast %122 : vector<8x1xf32> to vector<8x8xf32>
    %124 = arith.mulf %119, %123 : vector<8x8xf32>
    %125 = arith.truncf %124 : vector<8x8xf32> to vector<8x8xbf16>
    %cst_60 = arith.constant dense<0.000000e+00> : vector<8x8xf32>
    %126 = tpu.matmul %125, %113, %cst_60 {dimension_numbers = #tpu.dot_dimension_numbers<[1], [0], [0], [1], [0, 0, 1, 1], [], []>} : vector<8x8xbf16>, vector<8x8xbf16>, vector<8x8xf32> -> vector<8x8xf32>
    %c0_61 = arith.constant 0 : index
    %c24_62 = arith.constant 24 : index
    %127 = vector.load %arg17[%c0_61, %c24_62] : memref<8x32xf32, #tpu.memory_space<vmem>>, vector<8x8xf32>
    tpu.vector_store %arg17[%c0_61, %c24_62], %126 {strides = array<i32>} : memref<8x32xf32, #tpu.memory_space<vmem>>, vector<8x8xf32>,
    %c0_63 = arith.constant 0 : index
    %c0_64 = arith.constant 0 : index
    %128 = vector.load %arg17[%c0_63, %c0_64] : memref<8x32xf32, #tpu.memory_space<vmem>>, vector<8x32xf32>
    %129 = arith.truncf %128 : vector<8x32xf32> to vector<8x32xbf16>
    %c0_65 = arith.constant 0 : index
    %c0_66 = arith.constant 0 : index
    %c0_67 = arith.constant 0 : index
    %130 = vector.load %arg7[%c0_65, %c0_66, %c0_67] : memref<1x32x32xbf16, #tpu.memory_space<vmem>>, vector<1x32x32xbf16>
    %131 = vector.shape_cast %130 : vector<1x32x32xbf16> to vector<32x32xbf16>
    %cst_68 = arith.constant dense<0.000000e+00> : vector<8x32xf32>
    %132 = tpu.matmul %129, %131, %cst_68 {dimension_numbers = #tpu.dot_dimension_numbers<[1], [0], [0], [1], [0, 0, 1, 1], [], []>} : vector<8x32xbf16>, vector<32x32xbf16>, vector<8x32xf32> -> vector<8x32xf32>
    %c0_69 = arith.constant 0 : index
    %c0_70 = arith.constant 0 : index
    %c0_71 = arith.constant 0 : index
    %133 = vector.load %arg8[%c0_69, %c0_70, %c0_71] : memref<1x1x32xf32, #tpu.memory_space<vmem>>, vector<1x1x32xf32>
    %134 = vector.shape_cast %133 : vector<1x1x32xf32> to vector<1x32xf32>
    %135 = vector.broadcast %134 : vector<1x32xf32> to vector<8x32xf32>
    %136 = arith.addf %132, %135 : vector<8x32xf32>
    %137 = arith.addf %4, %136 : vector<8x32xf32>
    %c0_72 = arith.constant 0 : index
    %c0_73 = arith.constant 0 : index
    %c0_74 = arith.constant 0 : index
    %138 = vector.load %arg9[%c0_72, %c0_73, %c0_74] : memref<1x1x32xf32, #tpu.memory_space<vmem>>, vector<1x1x32xf32>
    %139 = vector.shape_cast %138 : vector<1x1x32xf32> to vector<1x32xf32>
    %c0_75 = arith.constant 0 : index
    %c0_76 = arith.constant 0 : index
    %c0_77 = arith.constant 0 : index
    %140 = vector.load %arg10[%c0_75, %c0_76, %c0_77] : memref<1x1x32xf32, #tpu.memory_space<vmem>>, vector<1x1x32xf32>
    %141 = vector.shape_cast %140 : vector<1x1x32xf32> to vector<1x32xf32>
    %cst_78 = arith.constant dense<0.000000e+00> : vector<8xf32>
    %142 = vector.multi_reduction <add>, %137, %cst_78 [1] : vector<8x32xf32> to vector<8xf32>
    %143 = vector.shape_cast %142 : vector<8xf32> to vector<8x1xf32>
    %cst_79 = arith.constant 3.200000e+01 : f32
    %144 = vector.broadcast %cst_79 : f32 to vector<8x1xf32>
    %145 = arith.divf %143, %144 : vector<8x1xf32>
    %146 = vector.broadcast %145 : vector<8x1xf32> to vector<8x32xf32>
    %147 = arith.subf %137, %146 : vector<8x32xf32>
    %148 = arith.mulf %147, %147 : vector<8x32xf32>
    %cst_80 = arith.constant dense<0.000000e+00> : vector<8xf32>
    %149 = vector.multi_reduction <add>, %148, %cst_80 [1] : vector<8x32xf32> to vector<8xf32>
    %150 = vector.shape_cast %149 : vector<8xf32> to vector<8x1xf32>
    %cst_81 = arith.constant 3.200000e+01 : f32
    %151 = vector.broadcast %cst_81 : f32 to vector<8x1xf32>
    %152 = arith.divf %150, %151 : vector<8x1xf32>
    %153 = vector.broadcast %145 : vector<8x1xf32> to vector<8x32xf32>
    %154 = arith.subf %137, %153 : vector<8x32xf32>
    %cst_82 = arith.constant 9.99999997E-7 : f32
    %155 = vector.broadcast %cst_82 : f32 to vector<8x1xf32>
    %156 = arith.addf %152, %155 : vector<8x1xf32>
    %157 = math.rsqrt %156 : vector<8x1xf32>
    %158 = vector.broadcast %157 : vector<8x1xf32> to vector<8x32xf32>
    %159 = arith.mulf %154, %158 : vector<8x32xf32>
    %160 = vector.broadcast %139 : vector<1x32xf32> to vector<8x32xf32>
    %161 = arith.mulf %159, %160 : vector<8x32xf32>
    %162 = vector.broadcast %141 : vector<1x32xf32> to vector<8x32xf32>
    %163 = arith.addf %161, %162 : vector<8x32xf32>
    %164 = arith.truncf %163 : vector<8x32xf32> to vector<8x32xbf16>
    %c0_83 = arith.constant 0 : index
    %c0_84 = arith.constant 0 : index
    %c0_85 = arith.constant 0 : index
    %165 = vector.load %arg11[%c0_83, %c0_84, %c0_85] : memref<1x32x64xbf16, #tpu.memory_space<vmem>>, vector<1x32x64xbf16>
    %166 = vector.shape_cast %165 : vector<1x32x64xbf16> to vector<32x64xbf16>
    %cst_86 = arith.constant dense<0.000000e+00> : vector<8x64xf32>
    %167 = tpu.matmul %164, %166, %cst_86 {dimension_numbers = #tpu.dot_dimension_numbers<[1], [0], [0], [1], [0, 0, 1, 1], [], []>} : vector<8x32xbf16>, vector<32x64xbf16>, vector<8x64xf32> -> vector<8x64xf32>
    %c0_87 = arith.constant 0 : index
    %c0_88 = arith.constant 0 : index
    %c0_89 = arith.constant 0 : index
    %168 = vector.load %arg12[%c0_87, %c0_88, %c0_89] : memref<1x1x64xf32, #tpu.memory_space<vmem>>, vector<1x1x64xf32>
    %169 = vector.shape_cast %168 : vector<1x1x64xf32> to vector<1x64xf32>
    %170 = vector.broadcast %169 : vector<1x64xf32> to vector<8x64xf32>
    %171 = arith.addf %167, %170 : vector<8x64xf32>
    %cst_90 = arith.constant 5.000000e-01 : f32
    %172 = vector.broadcast %cst_90 : f32 to vector<8x64xf32>
    %173 = arith.mulf %172, %171 : vector<8x64xf32>
    %cst_91 = arith.constant 0.707106769 : f32
    %174 = vector.broadcast %cst_91 : f32 to vector<8x64xf32>
    %175 = arith.mulf %171, %174 : vector<8x64xf32>
    %176 = math.erf %175 : vector<8x64xf32>
    %cst_92 = arith.constant 1.000000e+00 : f32
    %177 = vector.broadcast %cst_92 : f32 to vector<8x64xf32>
    %178 = arith.addf %177, %176 : vector<8x64xf32>
    %179 = arith.mulf %173, %178 : vector<8x64xf32>
    %180 = arith.truncf %179 : vector<8x64xf32> to vector<8x64xbf16>
    %c0_93 = arith.constant 0 : index
    %c0_94 = arith.constant 0 : index
    %c0_95 = arith.constant 0 : index
    %181 = vector.load %arg13[%c0_93, %c0_94, %c0_95] : memref<1x64x32xbf16, #tpu.memory_space<vmem>>, vector<1x64x32xbf16>
    %182 = vector.shape_cast %181 : vector<1x64x32xbf16> to vector<64x32xbf16>
    %cst_96 = arith.constant dense<0.000000e+00> : vector<8x32xf32>
    %183 = tpu.matmul %180, %182, %cst_96 {dimension_numbers = #tpu.dot_dimension_numbers<[1], [0], [0], [1], [0, 0, 1, 1], [], []>} : vector<8x64xbf16>, vector<64x32xbf16>, vector<8x32xf32> -> vector<8x32xf32>
    %c0_97 = arith.constant 0 : index
    %c0_98 = arith.constant 0 : index
    %c0_99 = arith.constant 0 : index
    %184 = vector.load %arg14[%c0_97, %c0_98, %c0_99] : memref<1x1x32xf32, #tpu.memory_space<vmem>>, vector<1x1x32xf32>
    %185 = vector.shape_cast %184 : vector<1x1x32xf32> to vector<1x32xf32>
    %186 = vector.broadcast %185 : vector<1x32xf32> to vector<8x32xf32>
    %187 = arith.addf %183, %186 : vector<8x32xf32>
    %188 = arith.addf %137, %187 : vector<8x32xf32>
    %c0_100 = arith.constant 0 : index
    %c0_101 = arith.constant 0 : index
    %c0_102 = arith.constant 0 : index
    %189 = vector.load %arg15[%c0_100, %c0_101, %c0_102] : memref<1x8x32xf32, #tpu.memory_space<vmem>>, vector<1x8x32xf32>
    %190 = vector.shape_cast %189 : vector<1x8x32xf32> to vector<8x32xf32>
    %191 = vector.shape_cast %188 : vector<8x32xf32> to vector<1x8x32xf32>
    tpu.vector_store %arg15[%c0_100, %c0_101, %c0_102], %191 {strides = array<i32>} : memref<1x8x32xf32, #tpu.memory_space<vmem>>, vector<1x8x32xf32>,
    return
  }
  func.func @transform_0(%arg0: i32, %arg1: i32) -> (i32, i32, i32) {
    %c0_i32 = arith.constant 0 : i32
    %c0_i32_0 = arith.constant 0 : i32
    %c0_i32_1 = arith.constant 0 : i32
    return %arg0, %c0_i32, %c0_i32_0 : i32, i32, i32
  }
  func.func @transform_1(%arg0: i32, %arg1: i32) -> (i32, i32, i32) {
    %c0_i32 = arith.constant 0 : i32
    %c0_i32_0 = arith.constant 0 : i32
    %c0_i32_1 = arith.constant 0 : i32
    return %arg1, %c0_i32, %c0_i32_0 : i32, i32, i32
  }
  func.func @transform_2(%arg0: i32, %arg1: i32) -> (i32, i32, i32) {
    %c0_i32 = arith.constant 0 : i32
    %c0_i32_0 = arith.constant 0 : i32
    %c0_i32_1 = arith.constant 0 : i32
    return %arg1, %c0_i32, %c0_i32_0 : i32, i32, i32
  }
  func.func @transform_3(%arg0: i32, %arg1: i32) -> (i32, i32, i32) {
    %c0_i32 = arith.constant 0 : i32
    %c0_i32_0 = arith.constant 0 : i32
    %c0_i32_1 = arith.constant 0 : i32
    return %arg1, %c0_i32, %c0_i32_0 : i32, i32, i32
  }
  func.func @transform_4(%arg0: i32, %arg1: i32) -> (i32, i32, i32) {
    %c0_i32 = arith.constant 0 : i32
    %c0_i32_0 = arith.constant 0 : i32
    %c0_i32_1 = arith.constant 0 : i32
    return %arg1, %c0_i32, %c0_i32_0 : i32, i32, i32
  }
  func.func @transform_5(%arg0: i32, %arg1: i32) -> (i32, i32, i32) {
    %c0_i32 = arith.constant 0 : i32
    %c0_i32_0 = arith.constant 0 : i32
    %c0_i32_1 = arith.constant 0 : i32
    return %arg1, %c0_i32, %c0_i32_0 : i32, i32, i32
  }
  func.func @transform_6(%arg0: i32, %arg1: i32) -> (i32, i32, i32) {
    %c0_i32 = arith.constant 0 : i32
    %c0_i32_0 = arith.constant 0 : i32
    %c0_i32_1 = arith.constant 0 : i32
    return %arg1, %c0_i32, %c0_i32_0 : i32, i32, i32
  }
  func.func @transform_7(%arg0: i32, %arg1: i32) -> (i32, i32, i32) {
    %c0_i32 = arith.constant 0 : i32
    %c0_i32_0 = arith.constant 0 : i32
    %c0_i32_1 = arith.constant 0 : i32
    return %arg1, %c0_i32, %c0_i32_0 : i32, i32, i32
  }
  func.func @transform_8(%arg0: i32, %arg1: i32) -> (i32, i32, i32) {
    %c0_i32 = arith.constant 0 : i32
    %c0_i32_0 = arith.constant 0 : i32
    %c0_i32_1 = arith.constant 0 : i32
    return %arg1, %c0_i32, %c0_i32_0 : i32, i32, i32
  }
  func.func @transform_9(%arg0: i32, %arg1: i32) -> (i32, i32, i32) {
    %c0_i32 = arith.constant 0 : i32
    %c0_i32_0 = arith.constant 0 : i32
    %c0_i32_1 = arith.constant 0 : i32
    return %arg1, %c0_i32, %c0_i32_0 : i32, i32, i32
  }
  func.func @transform_10(%arg0: i32, %arg1: i32) -> (i32, i32, i32) {
    %c0_i32 = arith.constant 0 : i32
    %c0_i32_0 = arith.constant 0 : i32
    %c0_i32_1 = arith.constant 0 : i32
    return %arg1, %c0_i32, %c0_i32_0 : i32, i32, i32
  }
  func.func @transform_11(%arg0: i32, %arg1: i32) -> (i32, i32, i32) {
    %c0_i32 = arith.constant 0 : i32
    %c0_i32_0 = arith.constant 0 : i32
    %c0_i32_1 = arith.constant 0 : i32
    return %arg1, %c0_i32, %c0_i32_0 : i32, i32, i32
  }
  func.func @transform_12(%arg0: i32, %arg1: i32) -> (i32, i32, i32) {
    %c0_i32 = arith.constant 0 : i32
    %c0_i32_0 = arith.constant 0 : i32
    %c0_i32_1 = arith.constant 0 : i32
    return %arg1, %c0_i32, %c0_i32_0 : i32, i32, i32
  }
  func.func @transform_13(%arg0: i32, %arg1: i32) -> (i32, i32, i32) {
    %c0_i32 = arith.constant 0 : i32
    %c0_i32_0 = arith.constant 0 : i32
    %c0_i32_1 = arith.constant 0 : i32
    return %arg0, %c0_i32, %c0_i32_0 : i32, i32, i32
  }
}

</mosaic_0001>

<bundles_post_ra>
// kernel: encoder_forward.1
= control target key start
LH: loop header
LB: loop body
LE: loop exit
PB: predicated region body
PF: predicated region fallthrough
CT: control target
= control target key end

     0   :  { %s2962_s0 = inlined_call_operand.hbm [shape: f32[2,8,32], index: 0, kind: input, shape index: {}]   ;;  %s2963_s1 = inlined_call_operand.vmem [shape: f32[2,1,32], index: 1, kind: input, shape index: {}]   ;;  %s2964_s2 = inlined_call_operand.vmem [shape: f32[2,1,32], index: 2, kind: input, shape index: {}]   ;;  %s2965_s3 = inlined_call_operand.vmem [shape: bf16[2,32,96], index: 3, kind: input, shape index: {}]   ;;  %s2966_s4 = inlined_call_operand.vmem [shape: f32[2,1,96], index: 4, kind: input, shape index: {}]   ;;  %s2967_s5 = inlined_call_operand.vmem [shape: bf16[2,32,32], index: 5, kind: input, shape index: {}]   ;;  %s2968_s6 = inlined_call_operand.hbm [shape: f32[2,1,32], index: 6, kind: input, shape index: {}]   ;;  %s2969_s7 = inlined_call_operand.vmem [shape: f32[2,1,32], index: 7, kind: input, shape index: {}]   ;;  %s2970_s8 = inlined_call_operand.vmem [shape: f32[2,1,32], index: 8, kind: input, shape index: {}]   ;;  %s2971_s9 = inlined_call_operand.vmem [shape: bf16[2,32,64], index: 9, kind: input, shape index: {}]   ;;  %s2972_s10 = inlined_call_operand.hbm [shape: f32[2,1,64], index: 10, kind: input, shape index: {}]   ;;  %s2973_s11 = inlined_call_operand.vmem [shape: bf16[2,64,32], index: 11, kind: input, shape index: {}]   ;;  %s2974_s12 = inlined_call_operand.hbm [shape: f32[2,1,32], index: 12, kind: input, shape index: {}]   ;;  %s2975_s13 = inlined_call_operand.hbm [shape: f32[2,8,32], index: 13, kind: output, shape index: {}]  }
   0x1   :  { %2995 = sst [smem:[#allocation30_spill]] %s2962_s0 }
   0x2   :  { %2996 = sst [smem:[#allocation31_spill]] %s2963_s1 }
   0x3   :  { %2997 = sst [smem:[#allocation32_spill]] %s2964_s2 }
   0x4   :  { %2998 = sst [smem:[#allocation33_spill]] %s2965_s3 }
   0x5   :  { %2999 = sst [smem:[#allocation34_spill]] %s2966_s4 }
   0x6   :  { %3000 = sst [smem:[#allocation35_spill]] %s2967_s5 }
   0x7   :  { %3001 = sst [smem:[#allocation36_spill]] %s2968_s6 }
   0x8   :  { %3002 = sst [smem:[#allocation37_spill]] %s2969_s7 }
   0x9   :  { %3003 = sst [smem:[#allocation38_spill]] %s2970_s8 }
   0xa   :  { %3004 = sst [smem:[#allocation39_spill]] %s2971_s9 }
   0xb   :  { %3005 = sst [smem:[#allocation40_spill]] %s2972_s10 }
   0xc   :  { %3006 = sst [smem:[#allocation41_spill]] %s2973_s11 }
   0xd   :  { %3007 = sst [smem:[#allocation42_spill]] %s2974_s12 }
   0xe   :  { %3008 = sst [smem:[#allocation43_spill]] %s2975_s13 }
   0xf   :  { %18 = vsyncpa [#allocation5], 0 }
  0x10   :  { %20 = vsyncpa [#allocation5 + $0x1], 0 }
  0x11   :  { %21 = vsyncpa [#allocation8], 0 }
  0x12   :  { %23 = vsyncpa [#allocation8 + $0x1], 0 }
  0x13   :  { %24 = vsyncpa [#allocation11], 0 }
  0x14   :  { %26 = vsyncpa [#allocation11 + $0x1], 0 }
  0x15   :  { %27 = vsyncpa [#allocation6], 0 }
  0x16   :  { %29 = vsyncpa [#allocation6 + $0x1], 0  ;;  %s2480_s25 = smov 0   ;;  %s2482_s26 = smov 0  }
  0x17   :  { %s2484_s27 = smov 0   ;;  %s2486_s28 = smov 0  }
  0x18   :  { %s2488_s29 = smov 0   ;;  %s2490_s30 = smov 0  }
  0x19   :  { %s2492_s14 = smov 0   ;;  %s2494_s15 = smov 0  }
  0x1a   :  { %s2496_s16 = smov 0   ;;  %s2498_s17 = smov 0  }
  0x1b   :  { %s2500_s18 = smov 0  }
  0x1c LB: > { %3009 = sst [smem:[#allocation17_spill]] %s2355_s27  ;;  %s2534_s19 = sadd.s32 4294967295, %s2387_s18   ;;  %s2387_s18 = sphi %s2500_s18, %s35_s18   ;;  %s2383_s17 = sphi %s2498_s17, %s3077_s17   ;;  %s2379_s16 = sphi %s2496_s16, %s3076_s16   ;;  %s2375_s15 = sphi %s2494_s15, %s3075_s15   ;;  %s2371_s14 = sphi %s2492_s14, %s3074_s14   ;;  %s2367_s30 = sphi %s2490_s30, %s3073_s30   ;;  %s2363_s29 = sphi %s2488_s29, %s3072_s29   ;;  %s2359_s28 = sphi %s2486_s28, %s3071_s28   ;;  %s2355_s27 = sphi %s2484_s27, %s3070_s27   ;;  %s2351_s26 = sphi %s2482_s26, %s3079_s26   ;;  %s2347_s25 = sphi %s2480_s25, %s3078_s25  }
  0x1d   : > { %3010 = sst [smem:[#allocation18_spill]] %s2359_s28  ;;  %s44_s20 = sadd.s32 1, %s2379_s16 }
  0x1e   : > { %3011 = sst [smem:[#allocation19_spill]] %s2363_s29  ;;  %p2537_p0 = scmp.ge.s32.totalorder %s44_s20, 2 }
  0x1f   : > { %3012 = sst [smem:[#allocation20_spill]] %s2367_s30  ;;  %p62_p1 = scmp.eq.s32.totalorder %s2387_s18, 0 }
  0x20   : > { %3013 = sst [smem:[#allocation21_spill]] %s2371_s14  ;;  %p2980_p2 = scmp.eq.s32.totalorder %s2534_s19, 0 }
  0x21   : > { %3014 = sst [smem:[#allocation22_spill]] %s2375_s15  ;;  %s210_s22 = sadd.s32 1, %s2355_s27 }
  0x22   : > { %3015 = sst [smem:[#allocation23_spill]] %s2379_s16  ;;  %s3081_s20 = smov (%p2537_p0, %s44_s20), 0 }
  0x23   : > { %3016 = sst [smem:[#allocation24_spill]] %s2383_s17  ;;  %p217_p3 = scmp.ne.s32.totalorder %s2355_s27, %s2351_s26 }
  0x24   : > { %3018 = sst [smem:[#allocation25_spill]] %s3081_s20  ;;  %p223_p4 = scmp.ne.s32.totalorder %s2351_s26, %s2347_s25 }
  0x25   : > { %s207_s23 = ssub.s32 %s2379_s16, %s3081_s20  ;;  %p219_p6 = por %p217_p3, %p62_p1 }
  0x26   : > { %p208_p5 = scmp.eq.s32.totalorder %s207_s23, 0  ;;  %p2557_p7 = por %p223_p4, %p2980_p2 }
  0x27   : > { %p2979_p8 = scmp.lt.s32.totalorder %s2387_s18, 4  ;;  %s481_s15 = sand.u32 1, %s2387_s18  }
  0x28   : > { %s3019_s24 = scalar_select %p2557_p7, 1, 0 }
  0x29   : > { %s2563_s13 = scalar_select %p208_p5, %s2355_s27, %s210_s22  }
  0x2a   : > { %3020 = sst [smem:[#allocation26_spill]] %s3019_s24  ;;  %s2567_s11 = sand.u32 1, %s2355_s27  }
  0x2b   : > { %3021 = sst [smem:[#allocation27_spill]] %s2563_s13  ;;  %s2570_s9 = sshll.u32 %s2379_s16, 4 }
  0x2c   : > { %s484_s25 = scalar_lea.vmem [#allocation7], %s2567_s11  ;;  %s3022_s6 = sld [smem:[#allocation36_spill]] }
  0x2d   : > { %s491_s20 = sshll.u32 %s484_s25, 4  ;;  %p2579_p9 = pnand %p2979_p8, %p219_p6  ;;  %s492_s20 = int_to_ptr.vmem [resolvable:$true] %s491_s20 }
  0x2e   : > { %p1818_p10 = scmp.ge.s32.totalorder %s2387_s18, 1  ;;  %p558_p11 = scmp.lt.s32.totalorder %s2387_s18, 5 }
  0x2f   : > { %s2585_s22 = scalar_lea.sflag [#allocation8], %s481_s15  ;;  %p2981_p12 = pneg %p2579_p9 }
  0x30   : > { %s2160_s16 = scalar_lea.vmem %s492_s20, 16  ;;  %s2389_s8 = smov [#allocation7]  }
  0x31   : > { %p2161_p13 = scmp.ne.s32.totalorder %s492_s20, %s2160_s16  ;;  %s2165_s25 = sshll.u32 %s2389_s8, 4  ;;  %s2166_s25 = int_to_ptr.vmem [resolvable:$false] %s2165_s25 }
  0x32   : > { %s489_s7 = scalar_lea.hbm %s3022_s6, %s2570_s9  ;;  %s2167_s23 = scalar_lea.vmem %s2166_s25, 32 }
  0x33   : > { %p2163_p3 = pnand %p2161_p13, %p2981_p12  ;;  %p2168_p5 = scmp.lt.s32.totalorder %s492_s20, %s2166_s25 }
  0x34   : > { %p2169_p6 = scmp.lt.s32.totalorder %s2167_s23, %s2160_s16 }
  0x35   : > { %p2164_p4 = pneg %p2163_p3 }
  0x36   : > { %p2170_p8 = por %p2169_p6, %p2168_p5 }
  0x38   : > { %p2171_p2 = pnand %p2170_p8, %p2164_p4 }
  0x3a   : > { %2174 = shalt.err (!%p2171_p2)
}
  0x3b   : > { %1998 = dma.hbm_to_vmem [thread:$0]  (!%p2579_p9), %s489_s7, 16, %s492_s20, %s2585_s22  }
  0x3c   : > { %p2599_p2 = pnand %p1818_p10, %p558_p11  ;;  %s1810_s16 = sadd.s32 4294967294, %s2387_s18  }
  0x3d   : > { %s47_s8 = sadd.s32 1, %s2383_s17  ;;  %s54_s25 = sadd.s32 1, %s2367_s30 }
  0x3e   : > { %s3083_s8 = smov (!%p2537_p0, %s47_s8), %s2383_s17  ;;  %p61_p8 = scmp.ne.s32.totalorder %s2367_s30, %s2363_s29 }
  0x3f   : > { %p67_p13 = scmp.ne.s32.totalorder %s2363_s29, %s2359_s28  ;;  %p49_p3 = scmp.ge.s32.totalorder %s3083_s8, 2 }
  0x40   : > { %p403_p4 = scmp.eq.s32.totalorder %s2534_s19, 3  ;;  %p2616_p5 = por %p62_p1, %p61_p8 }
  0x41   : > { %p3026_p10 = scmp.eq.s32.totalorder %s2534_s19, 0  ;;  %s3085_s8 = smov (%p49_p3, %s3083_s8), 0 }
  0x42   : > { %3028 = sst [smem:[#allocation28_spill]] %s3085_s8  ;;  %p2628_p0 = por %p403_p4, %p61_p8 }
  0x43   : > { %p2622_p11 = por %p3026_p10, %p67_p13  ;;  %p409_p1 = scmp.eq.s32.totalorder %s1810_s16, 3 }
  0x44   : > { %s3029_s21 = scalar_select %p2628_p0, 1, 0 }
  0x45   : > { %s3027_s20 = scalar_select %p2622_p11, 1, 0 }
  0x46   : > { %s51_s23 = ssub.s32 %s2383_s17, %s3085_s8  ;;  %s429_s6 = sand.u32 1, %s2367_s30  }
  0x47   : > { %p52_p6 = scmp.eq.s32.totalorder %s51_s23, 0  ;;  %p2635_p12 = por %p409_p1, %p67_p13 }
  0x48   : > { %s1813_s27 = sshll.u32 %s429_s6, 3  ;;  %s1814_s3 = sshll.u32 %s2383_s17, 7 }
  0x49   : > { %s3030_s13 = scalar_select %p2635_p12, 1, 0 }
  0x4a   : > { %s2640_s28 = scalar_select %p52_p6, %s2367_s30, %s54_s25  }
  0x4b   : > { %s3032_s0 = sld [smem:[#allocation30_spill]]  ;;  %s433_s14 = scalar_lea.vmem [#allocation4], %s1813_s27 }
  0x4c   : > { %3031 = sst [smem:[#allocation29_spill]] %s2640_s28  ;;  %s440_s24 = sshll.u32 %s433_s14, 4  ;;  %s441_s24 = int_to_ptr.vmem [resolvable:$true] %s440_s24 }
  0x4d   : > { %p3033_p8 = scmp.lt.s32.totalorder %s2387_s18, 4  ;;  %s3035_s10 = sld [smem:[#allocation40_spill]] }
  0x4e   : > { %s521_s28 = scalar_lea.vmem [#allocation9], %s2567_s11  ;;  %s430_s30 = scalar_lea.sflag [#allocation5], %s429_s6 }
  0x4f   : > { %p2650_p3 = pnand %p3033_p8, %p2616_p5  ;;  %s528_s17 = sshll.u32 %s521_s28, 4  ;;  %s529_s17 = int_to_ptr.vmem [resolvable:$true] %s528_s17 }
  0x50   : > { %s2188_s2 = scalar_lea.vmem %s441_s24, 128 }
  0x51   : > { %s438_s1 = scalar_lea.hbm %s3032_s0, %s1814_s3  ;;  %p2177_p13 = pneg %p2650_p3 }
  0x52   : > { %p2189_p4 = scmp.ne.s32.totalorder %s441_s24, %s2188_s2  ;;  %s2390_s3 = smov [#allocation4]  }
  0x53   : > { %s526_s25 = scalar_lea.hbm %s3035_s10, %s2570_s9  ;;  %s2193_s4 = sshll.u32 %s2390_s3, 4  ;;  %s2194_s4 = int_to_ptr.vmem [resolvable:$false] %s2193_s4 }
  0x54   : > { %p2191_p10 = pnand %p2189_p4, %p2177_p13  ;;  %s2195_s27 = scalar_lea.vmem %s2194_s4, 256 }
  0x55   : > { %p2196_p5 = scmp.lt.s32.totalorder %s441_s24, %s2194_s4  ;;  %p2197_p6 = scmp.lt.s32.totalorder %s2195_s27, %s2188_s2 }
  0x56   : > { %p2192_p1 = pneg %p2191_p10 }
  0x57   : > { %p2198_p8 = por %p2197_p6, %p2196_p5 }
  0x59   : > { %p2199_p12 = pnand %p2198_p8, %p2192_p1 }
  0x5b   : > { %2202 = shalt.err (!%p2199_p12)
}
  0x5c   : > { %1995 = dma.hbm_to_vmem [thread:$0]  (!%p2650_p3), %s438_s1, 128, %s441_s24, %s430_s30  }
  0x5d   : > { %s2216_s6 = scalar_lea.vmem %s529_s17, 16  ;;  %p3036_p7 = pneg %p2579_p9 }
  0x5e   : > { %p2217_p0 = scmp.ne.s32.totalorder %s529_s17, %s2216_s6  ;;  %s2391_s28 = smov [#allocation9]  }
  0x5f   : > { %s2221_s14 = sshll.u32 %s2391_s28, 4  ;;  %s2222_s14 = int_to_ptr.vmem [resolvable:$false] %s2221_s14 }
  0x60   : > { %p2219_p13 = pnand %p2217_p0, %p3036_p7  ;;  %s2223_s8 = scalar_lea.vmem %s2222_s14, 32 }
  0x61   : > { %p2224_p10 = scmp.lt.s32.totalorder %s529_s17, %s2222_s14  ;;  %p2225_p11 = scmp.lt.s32.totalorder %s2223_s8, %s2216_s6 }
  0x62   : > { %p2220_p4 = pneg %p2219_p13 }
  0x63   : > { %p2226_p5 = por %p2225_p11, %p2224_p10 }
  0x65   : > { %p2227_p1 = pnand %p2226_p5, %p2220_p4 }
  0x67   : > { %2230 = shalt.err (!%p2227_p1)
}
  0x68   : > { %2001 = dma.hbm_to_vmem [thread:$0]  (!%p2579_p9), %s526_s25, 16, %s529_s17, %s2585_s22  }
  0x69   : > { %s3037_s12 = sld [smem:[#allocation42_spill]]  ;;  %s546_s23 = scalar_lea.vmem [#allocation10], %s2567_s11 }
  0x6a   : > { %s553_s2 = sshll.u32 %s546_s23, 4  ;;  %s544_s3 = scalar_lea.sflag [#allocation11], %s2567_s11  ;;  %s554_s2 = int_to_ptr.vmem [resolvable:$true] %s553_s2 }
  0x6b   : > { %s2244_s4 = scalar_lea.vmem %s554_s2, 16  ;;  %p3038_p12 = pneg %p2579_p9 }
  0x6c   : > { %p2245_p7 = scmp.ne.s32.totalorder %s554_s2, %s2244_s4  ;;  %s2392_s27 = smov [#allocation10]  }
  0x6d   : > { %s2249_s6 = sshll.u32 %s2392_s27, 4  ;;  %s2250_s6 = int_to_ptr.vmem [resolvable:$false] %s2249_s6 }
  0x6e   : > { %p2247_p11 = pnand %p2245_p7, %p3038_p12  ;;  %s2251_s28 = scalar_lea.vmem %s2250_s6, 32 }
  0x6f   : > { %s551_s16 = scalar_lea.hbm %s3037_s12, %s2570_s9  ;;  %p2252_p3 = scmp.lt.s32.totalorder %s554_s2, %s2250_s6 }
  0x70   : > { %p2248_p0 = pneg %p2247_p11  ;;  %p2253_p6 = scmp.lt.s32.totalorder %s2251_s28, %s2244_s4 }
  0x72   : > { %p2254_p8 = por %p2253_p6, %p2252_p3 }
  0x74   : > { %p2255_p13 = pnand %p2254_p8, %p2248_p0 }
  0x76   : > { %2258 = shalt.err (!%p2255_p13)
}
  0x77   : > { %2004 = dma.hbm_to_vmem [thread:$0]  (!%p2579_p9), %s551_s16, 16, %s554_s2, %s544_s3  }
  0x78   : > { %562 = sbr.rel (%p2599_p2) target bundleno = 2625 (0xa41), region = 72  ;;  %s2688_s9 = sand.u32 (!%p2599_p2), 1, %s2363_s29  }
  0x79   : > { %s2993_s11 = sshll.u32 (!%p2599_p2), %s2688_s9, 3  ;;  %s565_s17 = scalar_lea.sflag (!%p2599_p2), [#allocation5], %s2688_s9 }
  0x7a   : > { %s568_s22 = scalar_lea.vmem (!%p2599_p2), [#allocation4], %s2993_s11  ;;  %p3039_p4 = scmp.ne.s32.totalorder (!%p2599_p2), %s3027_s20, 0 }
  0x7d   : > { %2330 = dma.done.wait (%p3039_p4), %s565_s17, 128  }
  0x7e   : > { %2332 = vsyncadd (%p3039_p4), %s565_s17, 4294967168  ;;  %s3040_s5 = sld [smem:[#allocation26_spill]]  ;;  %s573_s15 = sand.u32 1, %s2534_s19  }
  0x7f   : > { %s2700_s25 = sand.u32 1, %s2351_s26   ;;  %s574_s14 = scalar_lea.sflag [#allocation8], %s573_s15 }
  0x84   : > { %p3041_p9 = scmp.ne.s32.totalorder %s3040_s5, 0 }
  0x86   : > { %2334 = dma.done.wait (%p3041_p9), %s574_s14, 32  }
  0x87   : > { %2336 = vsyncadd (%p3041_p9), %s574_s14, 4294967264  ;;  %s590_s1 = scalar_lea.sflag [#allocation11], %s2700_s25 }
  0x88   : > { %2338 = dma.done.wait (%p3041_p9), %s590_s1, 16  }
  0x89   : > { %2340 = vsyncadd (%p3041_p9), %s590_s1, 4294967280  ;;  %s3042_s19 = sld [smem:[#allocation21_spill]] }
  0x8a   : > { %s3046_s20 = sld [smem:[#allocation33_spill]] }
  0x8b   : > { %s3047_s11 = sld [smem:[#allocation35_spill]] }
  0x8c   : > { %s3048_s2 = sld [smem:[#allocation37_spill]] }
  0x8d   : > { %s3049_s27 = sld [smem:[#allocation38_spill]] }
  0x8e   : > { %s3050_s5 = sld [smem:[#allocation39_spill]] }
  0x8f   : > { %p682_p2 = scmp.lt.s32.totalorder %s3042_s19, 1  ;;  %s3051_s14 = sld [smem:[#allocation41_spill]] }
  0x90   : > { %p1829_p10 = scmp.ne.s32.totalorder %s3042_s19, 0 }
  0x91   : > { %s2716_s24 = scalar_select %p682_p2, %s3042_s19, 1 }
  0x93   : > { %s1864_s28 = sshll.u32 %s2716_s24, 4  ;;  %s703_s12 = scalar_lea.vmem %s3048_s2, %s2716_s24 }
  0x94   : > { %s692_s7 = scalar_lea.vmem %s3046_s20, %s1864_s28  ;;  %s2737_s0 = scalar_lea.vmem %s3047_s11, %s1864_s28 }
  0x95   : > { %s706_s6 = scalar_lea.vmem %s3049_s27, %s2716_s24  ;;  %s2750_s15 = scalar_lea.vmem %s3050_s5, %s1864_s28 }
  0x96   : > { %s1867_s30 = sshll.u32 %s2716_s24, 5  ;;  %s3052_s11 = sshll.u32 %s2688_s9, 3 }
  0x97   : > { %s2756_s8 = scalar_lea.vmem %s3051_s14, %s1867_s30  ;;  %s2760_s16 = scalar_lea.vmem [#allocation12], %s3052_s11 }
  0x98   : > { %721 = sbr.rel (%p1829_p10) target bundleno = 159 (0x9f), region = 92 }
  0x9d   : > { %v722_v0 = vld [vmem:[%s568_s22] sm:$0xff]  ;;  %vm723_vm0 = vcmask 261120  }
  0x9e   : > { %724 = vst.msk [vmem:[%s2760_s16] sm:$0xff] %vm723_vm0, %v722_v0 }
  0x9f PF: > { %vm728_vm1 = vcmask 261120   ;;  %v2115_v8 = vld [vmem:[%s692_s7 + $0x8] sm:$0xff]   ;;  %v2393_v9 = vmov 0.0   ;;  %vm2394_vm2 = vmmov 0   ;;  %v2116_v10 = vld [vmem:[%s692_s7] sm:$0xff]   ;;  %s3053_s22 = sld [smem:[#allocation31_spill]] }
  0xa0   : > { %1898 = vmatprep.subr.bf16.mxu0 %v2393_v9  ;;  %1902 = vmatprep.mubr.msk.bf16.mxu0 %vm2394_vm2, %v2393_v9  ;;  %s3055_s14 = sld [smem:[#allocation32_spill]]  ;;  %vm824_vm3 = vcmask 785408   ;;  %s2395_s17 = smov 96   ;;  %vm833_vm4 = vcmask 64512   ;;  %vm897_vm5 = vcmask 1043456   ;;  %vm1062_vm6 = vcmask 130112  }
  0xa1   : > { %1899 = vmatpush3.bf16.msra.mxu0 %v2115_v8  ;;  %1906 = vmatprep.subr.bf16.mxu1 %v2393_v9  ;;  %s3057_s4 = sld [smem:[#allocation34_spill]]  ;;  %s2396_s5 = smov 120   ;;  %vm1184_vm7 = vcmask 195712   ;;  %vm1306_vm8 = vcmask 261312   ;;  %vm1518_vm9 = vcmask 523264  }
  0xa2   : > { %1900 = vmatprep.subr.bf16.mxu0 %v2393_v9  ;;  %1908 = vmatprep.mubr.msk.bf16.mxu1 %vm2394_vm2, %v2393_v9  ;;  %s2397_s30 = smov 88   ;;  %s2398_s20 = smov 80  }
  0xa3   : > { %s2399_s1 = smov 112   ;;  %s2400_s11 = smov 72  }
  0xa4   : > { %s2401_s10 = smov 104   ;;  %s2402_s29 = smov 64  }
  0xa5   : > { %v2765_v1 = vld [vmem:[%s2760_s16] sm:$0xff]  ;;  %1901 = vmatpush3.bf16.msra.mxu0 %v2116_v10  ;;  %s3054_s19 = scalar_lea.vmem %s3053_s22, %s2716_s24  ;;  %s2403_s22 = smov 56  }
  0xa6   : > { %v729_v2 = vsel %vm728_vm1, %v2765_v1, 0.0  ;;  %1912 = vmatprep.subr.bf16.mxu0 %v2393_v9  ;;  %v1830_v15 = vld [vmem:[%s3054_s19] ss:$0 sm:$0xff]  ;;  %s3056_s7 = scalar_lea.vmem %s3055_s14, %s2716_s24  ;;  %s2404_s19 = smov 48  }
  0xa7   : > { %730 = vadd.xlane.f32.xlu0 %v729_v2  ;;  %v1831_v17 = vld [vmem:[%s3056_s7] ss:$0 sm:$0xff]  ;;  %s3058_s27 = scalar_lea.vmem %s3057_s4, %s2716_s24  ;;  %s2405_s2 = smov 40  }
  0xa8   : > { %v1832_v21 = vld [vmem:[%s3058_s27] ss:$0 sm:$0xff]  ;;  %s2406_s28 = smov 8   ;;  %s2407_s14 = smov 16  }
  0xa9   : > { %s2408_s7 = smov 24   ;;  %s3063_s24 = sld [smem:[#allocation22_spill]] }
  0xaa   : > { %p3066_p1 = scmp.ne.s32.totalorder %s3029_s21, 0 }
 0x130   : > { %v731_v3 = vpop.xlane.xlu0 %730 }
 0x131   : > { %v733_v4 = vmul.f32 0.03125, %v731_v3 }
 0x133   : > { %v734_v5 = vsub.f32 %v2765_v1, %v733_v4 }
 0x135   : > { %v735_v6 = vmul.f32 %v734_v5, %v734_v5 }
 0x137   : > { %v736_v7 = vsel %vm728_vm1, %v735_v6, 0.0 }
 0x138   : > { %737 = vadd.xlane.f32.xlu0 %v736_v7 }
 0x1c1   : > { %v738_v11 = vpop.xlane.xlu0 %737 }
 0x1c2   : > { %v739_v12 = vmul.f32 0.03125, %v738_v11 }
 0x1c4   : > { %v740_v13 = vadd.f32 1e-06, %v739_v12 }
 0x1c6   : > { %2125 = vrsqrt.f32 %v740_v13 }
 0x1d3   : > { %v2126_v14 = vpop.eup %2125 }
 0x1d4   : > { %v742_v16 = vmul.f32 %v2126_v14, %v734_v5 }
 0x1d6   : > { %v749_v18 = vmul.f32 %v1830_v15, %v742_v16 }
 0x1d8   : > { %v756_v19 = vadd.f32 %v1831_v17, %v749_v18 }
 0x1da   : > { %v757_v20 = vpack.c.bf16 %v756_v19, %v756_v19 }
 0x1dc   : > { %1903 = vmatmul.mubr.msk.bf16.vlgmr.msra.gmra.mxu0 %vm728_vm1, %v757_v20 }
 0x1dd   : > { %1914 = vmatprep.mubr.msk.bf16.mxu0 %vm2394_vm2, %v2393_v9 }
 0x29c   : > { %v818_v22 = vpop.f32.mrf.mxu0 }
 0x29d   : > { %v819_v23 = vadd.f32 %v1832_v21, %v818_v22 }
 0x29e   : > { %v1904_v24 = vpop.f32.mrf.mxu0 }
 0x29f   : > { %825 = vst.msk [vmem:[#allocation2] sm:$0xff] %vm824_vm3, %v819_v23 }
 0x2a0   : > { %v821_v25 = vpop.f32.mrf.mxu0 }
 0x2a2   : > { %v1905_v26 = vpop.f32.mrf.mxu0 }
 0x2a6   : > { %v826_v27 = vld [vmem:[#allocation2] sm:$0xff] }
 0x2a7   : > { %v2797_v28 = vpack.c.bf16 %v826_v27, %v826_v27  ;;  %v827_v29 = vmul.f32 0.35355338, %v826_v27 }
 0x2a9   : > { %831 = vrot.lane.b32.xlu1 %v2797_v28, %s2395_s17  ;;  %v828_v30 = vpack.c.bf16 %v827_v29, %v827_v29 }
 0x2ab   : > { %947 = vrot.lane.b32.xlu0 %v828_v30, %s2396_s5  ;;  %s1578_s5 = sshll.u32 %s2760_s16, 4  ;;  %s2900_s5 = int_to_ptr.vmem [resolvable:$true] %s1578_s5 }
 0x2ad   : > { %950 = vrot.lane.b32.xlu1 %v2797_v28, %s2397_s30 }
 0x2b1   : > { %1072 = vrot.lane.b32.xlu1 %v2797_v28, %s2398_s20 }
 0x2b5   : > { %1069 = vrot.lane.b32.xlu1 %v828_v30, %s2399_s1  ;;  %s3065_s1 = sld [smem:[#allocation43_spill]] }
 0x2b9   : > { %1194 = vrot.lane.b32.xlu1 %v2797_v28, %s2400_s11 }
 0x2bd   : > { %1191 = vrot.lane.b32.xlu1 %v828_v30, %s2401_s10  ;;  %s2259_s10 = scalar_lea.vmem %s2900_s5, 128 }
 0x2be   : > { %p2260_p5 = scmp.ne.s32.totalorder %s2900_s5, %s2259_s10 }
 0x2c0   : > { %p2261_p7 = pnand %p2260_p5, %p3066_p1 }
 0x2c2   : > { %p2262_p12 = pneg %p2261_p7 }
 0x31b   : > { %v832_v31 = vpop.permute.xlu1 %831 }
 0x31c   : > { %v838_v32 = vsel %vm833_vm4, %v832_v31, 0 }
 0x31d   : > { %1907 = vmatpush3.bf16.xpose.msra.mxu1 %v838_v32  ;;  %v948_v36 = vpop.permute.xlu0 %947 }
 0x31e   : > { %1918 = vmatprep.subr.bf16.mxu1 %v2393_v9 }
 0x31f   : > { %v951_v33 = vpop.permute.xlu1 %950 }
 0x320   : > { %v956_v34 = vsel %vm833_vm4, %v951_v33, 0 }
 0x323   : > { %v1073_v35 = vpop.permute.xlu1 %1072 }
 0x324   : > { %1909 = vmatmul.mubr.msk.bf16.vlgmr.msra.gmra.mxu1 %vm833_vm4, %v828_v30  ;;  %v1078_v38 = vsel %vm833_vm4, %v1073_v35, 0 }
 0x325   : > { %1919 = vmatpush3.bf16.xpose.msra.mxu1 %v956_v34  ;;  %1920 = vmatprep.mubr.msk.bf16.mxu1 %vm2394_vm2, %v2393_v9 }
 0x326   : > { %1930 = vmatprep.subr.bf16.mxu1 %v2393_v9 }
 0x327   : > { %v1070_v37 = vpop.permute.xlu1 %1069 }
 0x32b   : > { %v1195_v39 = vpop.permute.xlu1 %1194 }
 0x32c   : > { %1921 = vmatmul.mubr.msk.bf16.vlgmr.msra.gmra.mxu1 %vm833_vm4, %v948_v36  ;;  %v1200_v40 = vsel %vm833_vm4, %v1195_v39, 0 }
 0x32d   : > { %1931 = vmatpush3.bf16.xpose.msra.mxu1 %v1078_v38  ;;  %1932 = vmatprep.mubr.msk.bf16.mxu1 %vm2394_vm2, %v2393_v9 }
 0x32e   : > { %1942 = vmatprep.subr.bf16.mxu1 %v2393_v9 }
 0x32f   : > { %v1192_v41 = vpop.permute.xlu1 %1191 }
 0x334   : > { %1933 = vmatmul.mubr.msk.bf16.vlgmr.msra.gmra.mxu1 %vm833_vm4, %v1070_v37 }
 0x335   : > { %1943 = vmatpush3.bf16.xpose.msra.mxu1 %v1200_v40  ;;  %1944 = vmatprep.mubr.msk.bf16.mxu1 %vm2394_vm2, %v2393_v9 }
 0x336   : > { %1954 = vmatprep.subr.bf16.mxu1 %v2393_v9 }
 0x33c   : > { %1945 = vmatmul.mubr.msk.bf16.vlgmr.msra.gmra.mxu1 %vm833_vm4, %v1192_v41 }
 0x33d   : > { %1958 = vmatprep.mubr.msk.bf16.mxu1 %vm2394_vm2, %v2393_v9 }
 0x3e4   : > { %v874_v42 = vpop.f32.mrf.mxu1 }
 0x3e5   : > { %v880_v43 = vsel %vm833_vm4, %v874_v42, -inf }
 0x3e6   : > { %881 = vmax.xlane.f32.xlu1 %v880_v43  ;;  %v1910_v44 = vpop.f32.mrf.mxu1 }
 0x3e8   : > { %v877_v45 = vpop.f32.mrf.mxu1 }
 0x3ea   : > { %v1911_v46 = vpop.f32.mrf.mxu1 }
 0x3ec   : > { %v992_v47 = vpop.f32.mrf.mxu1 }
 0x3ed   : > { %v998_v48 = vsel %vm833_vm4, %v992_v47, -inf }
 0x3ee   : > { %999 = vmax.xlane.f32.xlu0 %v998_v48  ;;  %v1922_v49 = vpop.f32.mrf.mxu1 }
 0x3f0   : > { %v995_v50 = vpop.f32.mrf.mxu1 }
 0x3f2   : > { %v1923_v51 = vpop.f32.mrf.mxu1 }
 0x3f4   : > { %v1114_v52 = vpop.f32.mrf.mxu1 }
 0x3f5   : > { %v1120_v53 = vsel %vm833_vm4, %v1114_v52, -inf }
 0x3f6   : > { %1121 = vmax.xlane.f32.xlu1 %v1120_v53  ;;  %v1934_v54 = vpop.f32.mrf.mxu1  ;;  %v2118_v53 = vld [vmem:[%s2737_s0] sm:$0xff]  }
 0x3f8   : > { %v1117_v55 = vpop.f32.mrf.mxu1 }
 0x3fa   : > { %v1935_v56 = vpop.f32.mrf.mxu1 }
 0x3fc   : > { %v1236_v57 = vpop.f32.mrf.mxu1 }
 0x3fd   : > { %v1242_v58 = vsel %vm833_vm4, %v1236_v57, -inf }
 0x3fe   : > { %1243 = vmax.xlane.f32.xlu0 %v1242_v58  ;;  %v1946_v59 = vpop.f32.mrf.mxu1 }
 0x400   : > { %v1239_v60 = vpop.f32.mrf.mxu1 }
 0x402   : > { %v1947_v61 = vpop.f32.mrf.mxu1 }
 0x46f   : > { %v882_v62 = vpop.xlane.xlu1 %881 }
 0x470   : > { %v883_v63 = vsub.f32 %v874_v42, %v882_v62 }
 0x472   : > { %v884_v0 = vmul.f32 1.442695, %v883_v63 }
 0x474   : > { %2127 = vpow2.f32 %v884_v0 }
 0x477   : > { %v1000_v2 = vpop.xlane.xlu0 %999 }
 0x478   : > { %v1001_v3 = vsub.f32 %v992_v47, %v1000_v2 }
 0x47a   : > { %v1002_v4 = vmul.f32 1.442695, %v1001_v3 }
 0x47c   : > { %2129 = vpow2.f32 %v1002_v4 }
 0x47f   : > { %v1122_v15 = vpop.xlane.xlu1 %1121 }
 0x480   : > { %v1123_v16 = vsub.f32 %v1114_v52, %v1122_v15  ;;  %v2117_v52 = vld [vmem:[%s2737_s0 + $0x8] sm:$0xff]   ;;  %s3059_s0 = scalar_lea.vmem [#allocation7], %s2700_s25 }
 0x481   : > { %v2128_v5 = vpop.eup %2127  ;;  %1955 = vmatpush3.bf16.msra.mxu1 %v2117_v52  ;;  %v1844_v4 = vld [vmem:[%s3059_s0] ss:$0 sm:$0xff] }
 0x482   : > { %v886_v6 = vsel %vm833_vm4, %v2128_v5, 0.0  ;;  %v1124_v17 = vmul.f32 1.442695, %v1123_v16  ;;  %1956 = vmatprep.subr.bf16.mxu1 %v2393_v9 }
 0x483   : > { %887 = vadd.xlane.f32.xlu1 %v886_v6 }
 0x485   : > { %1957 = vmatpush3.bf16.msra.mxu1 %v2118_v53 }
 0x486   : > { %1970 = vmatprep.subr.bf16.mxu1 %v2393_v9 }
 0x487   : > { %v1244_v7 = vpop.xlane.xlu0 %1243 }
 0x488   : > { %v1245_v8 = vsub.f32 %v1236_v57, %v1244_v7 }
 0x489   : > { %v2130_v10 = vpop.eup %2129 }
 0x48a   : > { %v1246_v11 = vmul.f32 1.442695, %v1245_v8  ;;  %v1004_v12 = vsel %vm833_vm4, %v2130_v10, 0.0 }
 0x48b   : > { %1005 = vadd.xlane.f32.xlu0 %v1004_v12 }
 0x48c   : > { %2131 = vpow2.f32 %v1246_v11 }
 0x48d   : > { %2133 = vpow2.f32 %v1124_v17 }
 0x494   : > { %892 = vrot.lane.b32.xlu1 %v2797_v28, %s2402_s29  ;;  %s2409_s29 = smov [#allocation12]  }
 0x499   : > { %v2132_v13 = vpop.eup %2131 }
 0x49a   : > { %v1248_v14 = vsel %vm833_vm4, %v2132_v13, 0.0  ;;  %v2134_v18 = vpop.eup %2133 }
 0x49b   : > { %1249 = vadd.xlane.f32.xlu0 %v1248_v14  ;;  %v1126_v19 = vsel %vm833_vm4, %v2134_v18, 0.0 }
 0x4b1   : > { %1010 = vrot.lane.b32.xlu0 %v2797_v28, %s2403_s22  ;;  %s2263_s22 = sshll.u32 %s2409_s29, 4  ;;  %s2264_s22 = int_to_ptr.vmem [resolvable:$false] %s2263_s22 }
 0x4b2   : > { %p2266_p11 = scmp.lt.s32.totalorder %s2900_s5, %s2264_s22 }
 0x4b8   : > { %1127 = vadd.xlane.f32.xlu1 %v1126_v19  ;;  %v2120_v19 = vld [vmem:[%s2750_s15] sm:$0xff]  }
 0x4c9   : > { %1132 = vrot.lane.b32.xlu1 %v2797_v28, %s2404_s19  ;;  %s2265_s19 = scalar_lea.vmem %s2264_s22, 256 }
 0x4ca   : > { %p2267_p0 = scmp.lt.s32.totalorder %s2265_s19, %s2259_s10 }
 0x4cc   : > { %p2268_p3 = por %p2267_p0, %p2266_p11 }
 0x4cd   : > { %1254 = vrot.lane.b32.xlu1 %v2797_v28, %s2405_s2 }
 0x4ce   : > { %p2269_p6 = pnand %p2268_p3, %p2262_p12 }
 0x50c   : > { %v888_v20 = vpop.xlane.xlu1 %887 }
 0x50d   : > { %2135 = vrcp.f32 %v888_v20 }
 0x510   : > { %v893_v21 = vpop.permute.xlu1 %892 }
 0x511   : > { %v899_v22 = vsel %vm897_vm5, %v893_v21, 0 }
 0x512   : > { %1913 = vmatpush3.bf16.msra.mxu0 %v899_v22 }
 0x513   : > { %1924 = vmatprep.subr.bf16.mxu0 %v2393_v9 }
 0x514   : > { %v1006_v23 = vpop.xlane.xlu0 %1005 }
 0x515   : > { %2137 = vrcp.f32 %v1006_v23  ;;  %v1848_v23 = vld [vmem:[%s703_s12] ss:$0 sm:$0xff]  ;;  %s3062_s12 = scalar_lea.vmem [#allocation9], %s2700_s25 }
 0x51a   : > { %v2136_v24 = vpop.eup %2135 }
 0x51b   : > { %v890_v25 = vmul.f32 %v2136_v24, %v2128_v5 }
 0x51d   : > { %v891_v26 = vpack.c.bf16 %v890_v25, %v890_v25  ;;  %v1849_v25 = vld [vmem:[%s706_s6] ss:$0 sm:$0xff]  ;;  %s3064_s6 = scalar_lea.vmem [#allocation10], %s2700_s25  ;;  %s1565_s25 = scalar_lea.sflag [#allocation6], %s2688_s9 }
 0x51f   : > { %1915 = vmatmul.mubr.msk.bf16.vlgmr.msra.gmra.mxu0 %vm833_vm4, %v891_v26 }
 0x520   : > { %1926 = vmatprep.mubr.msk.bf16.mxu0 %vm2394_vm2, %v2393_v9 }
 0x522   : > { %v2138_v27 = vpop.eup %2137 }
 0x523   : > { %v1008_v29 = vmul.f32 %v2138_v27, %v2130_v10 }
 0x524   : > { %v1250_v28 = vpop.xlane.xlu0 %1249 }
 0x525   : > { %v1009_v32 = vpack.c.bf16 %v1008_v29, %v1008_v29  ;;  %v2121_v29 = vld [vmem:[%s2756_s8 + $0x18] sm:$0xff]  }
 0x528   : > { %v1011_v30 = vpop.permute.xlu0 %1010 }
 0x529   : > { %v1016_v31 = vsel %vm897_vm5, %v1011_v30, 0  ;;  %v2122_v30 = vld [vmem:[%s2756_s8 + $0x10] sm:$0xff]  }
 0x52a   : > { %1925 = vmatpush3.bf16.msra.mxu0 %v1016_v31  ;;  %v2123_v31 = vld [vmem:[%s2756_s8 + $0x8] sm:$0xff]  }
 0x52b   : > { %1936 = vmatprep.subr.bf16.mxu0 %v2393_v9 }
 0x52d   : > { %1927 = vmatmul.mubr.msk.bf16.vlgmr.msra.gmra.mxu0 %vm833_vm4, %v1009_v32  ;;  %v2124_v32 = vld [vmem:[%s2756_s8] sm:$0xff]   ;;  %s1861_s8 = sshll.u32 %s3063_s24, 7 }
 0x52e   : > { %1938 = vmatprep.mubr.msk.bf16.mxu0 %vm2394_vm2, %v2393_v9  ;;  %s2898_s11 = scalar_lea.hbm %s3065_s1, %s1861_s8 }
 0x541   : > { %v1128_v33 = vpop.xlane.xlu1 %1127 }
 0x542   : > { %2139 = vrcp.f32 %v1128_v33  ;;  %v1850_v33 = vld [vmem:[%s3062_s12] ss:$0 sm:$0xff] }
 0x543   : > { %2141 = vrcp.f32 %v1250_v28 }
 0x545   : > { %v1133_v34 = vpop.permute.xlu1 %1132 }
 0x546   : > { %v1138_v35 = vsel %vm897_vm5, %v1133_v34, 0 }
 0x547   : > { %1937 = vmatpush3.bf16.msra.mxu0 %v1138_v35 }
 0x548   : > { %1948 = vmatprep.subr.bf16.mxu0 %v2393_v9 }
 0x549   : > { %v1255_v38 = vpop.permute.xlu1 %1254 }
 0x54a   : > { %v1260_v41 = vsel %vm897_vm5, %v1255_v38, 0 }
 0x54f   : > { %v2140_v36 = vpop.eup %2139 }
 0x550   : > { %v1130_v37 = vmul.f32 %v2140_v36, %v2134_v18  ;;  %v2142_v40 = vpop.eup %2141  ;;  %v2119_v18 = vld [vmem:[%s2750_s15 + $0x8] sm:$0xff]  }
 0x551   : > { %v1252_v42 = vmul.f32 %v2142_v40, %v2132_v13 }
 0x552   : > { %v1131_v39 = vpack.c.bf16 %v1130_v37, %v1130_v37 }
 0x553   : > { %v1253_v43 = vpack.c.bf16 %v1252_v42, %v1252_v42 }
 0x554   : > { %1939 = vmatmul.mubr.msk.bf16.vlgmr.msra.gmra.mxu0 %vm833_vm4, %v1131_v39 }
 0x555   : > { %1949 = vmatpush3.bf16.msra.mxu0 %v1260_v41  ;;  %1950 = vmatprep.mubr.msk.bf16.mxu0 %vm2394_vm2, %v2393_v9 }
 0x556   : > { %1962 = vmatprep.subr.bf16.mxu0 %v2393_v9 }
 0x55c   : > { %1951 = vmatmul.mubr.msk.bf16.vlgmr.msra.gmra.mxu0 %vm833_vm4, %v1253_v43 }
 0x55d   : > { %1966 = vmatprep.mubr.msk.bf16.mxu0 %vm2394_vm2, %v2393_v9  ;;  %1963 = vmatpush3.bf16.msra.mxu0 %v2119_v18 }
 0x55e   : > { %1964 = vmatprep.subr.bf16.mxu0 %v2393_v9 }
 0x561   : > { %1965 = vmatpush3.bf16.msra.mxu0 %v2120_v19 }
 0x5df   : > { %v935_v44 = vpop.f32.mrf.mxu0 }
 0x5e0   : > { %941 = vst.msk [vmem:[#allocation3] sm:$0xff] %vm833_vm4, %v935_v44  ;;  %v1854_v44 = vld [vmem:[%s3064_s6] ss:$0 sm:$0xff] }
 0x5e1   : > { %v1916_v45 = vpop.f32.mrf.mxu0 }
 0x5e3   : > { %v938_v46 = vpop.f32.mrf.mxu0 }
 0x5e5   : > { %v1917_v47 = vpop.f32.mrf.mxu0 }
 0x5ed   : > { %v1052_v48 = vpop.f32.mrf.mxu0 }
 0x5ee   : > { %1059 = vrot.lane.b32.xlu0 %v1052_v48, %s2406_s28 }
 0x5ef   : > { %v1928_v49 = vpop.f32.mrf.mxu0 }
 0x5f1   : > { %v1055_v50 = vpop.f32.mrf.mxu0 }
 0x5f3   : > { %v1929_v51 = vpop.f32.mrf.mxu0 }
 0x614   : > { %v1174_v54 = vpop.f32.mrf.mxu0 }
 0x615   : > { %1181 = vrot.lane.b32.xlu1 %v1174_v54, %s2407_s14 }
 0x616   : > { %v1940_v55 = vpop.f32.mrf.mxu0 }
 0x618   : > { %v1177_v56 = vpop.f32.mrf.mxu0 }
 0x61a   : > { %v1941_v57 = vpop.f32.mrf.mxu0 }
 0x61c   : > { %v1296_v58 = vpop.f32.mrf.mxu0 }
 0x61d   : > { %1303 = vrot.lane.b32.xlu0 %v1296_v58, %s2408_s7 }
 0x61e   : > { %v1952_v59 = vpop.f32.mrf.mxu0 }
 0x620   : > { %v1299_v60 = vpop.f32.mrf.mxu0 }
 0x622   : > { %v1953_v61 = vpop.f32.mrf.mxu0 }
 0x660   : > { %v1060_v62 = vpop.permute.xlu0 %1059 }
 0x661   : > { %1063 = vst.msk [vmem:[#allocation3] sm:$0xff] %vm1062_vm6, %v1060_v62 }
 0x687   : > { %v1182_v63 = vpop.permute.xlu1 %1181 }
 0x688   : > { %1185 = vst.msk [vmem:[#allocation3] sm:$0xff] %vm1184_vm7, %v1182_v63 }
 0x68f   : > { %v1304_v0 = vpop.permute.xlu0 %1303 }
 0x690   : > { %1307 = vst.msk [vmem:[#allocation3] sm:$0xff] %vm1306_vm8, %v1304_v0 }
 0x697   : > { %v1308_v2 = vld [vmem:[#allocation3] sm:$0xff] }
 0x698   : > { %v1309_v3 = vpack.c.bf16 %v1308_v2, %v1308_v2 }
 0x69a   : > { %1959 = vmatmul.mubr.msk.bf16.vlgmr.msra.gmra.mxu1 %vm728_vm1, %v1309_v3 }
 0x69b   : > { %1978 = vmatprep.mubr.msk.bf16.mxu1 %vm2394_vm2, %v2393_v9  ;;  %1971 = vmatpush3.bf16.msra.mxu1 %v2121_v29 }
 0x69c   : > { %1972 = vmatprep.subr.bf16.mxu1 %v2393_v9 }
 0x69f   : > { %1973 = vmatpush3.bf16.msra.mxu1 %v2122_v30 }
 0x6a0   : > { %1974 = vmatprep.subr.bf16.mxu1 %v2393_v9 }
 0x6a3   : > { %1975 = vmatpush3.bf16.msra.mxu1 %v2123_v31 }
 0x6a4   : > { %1976 = vmatprep.subr.bf16.mxu1 %v2393_v9 }
 0x6a7   : > { %1977 = vmatpush3.bf16.msra.mxu1 %v2124_v32 }
 0x75a   : > { %v1370_v5 = vpop.f32.mrf.mxu1 }
 0x75b   : > { %v1371_v6 = vadd.f32 %v1844_v4, %v1370_v5 }
 0x75c   : > { %v1960_v7 = vpop.f32.mrf.mxu1 }
 0x75d   : > { %v1376_v8 = vadd.f32 %v1371_v6, %v2765_v1 }
 0x75e   : > { %v1373_v10 = vpop.f32.mrf.mxu1 }
 0x75f   : > { %v1379_v11 = vsel %vm728_vm1, %v1376_v8, 0.0 }
 0x760   : > { %1380 = vadd.xlane.f32.xlu1 %v1379_v11  ;;  %v1961_v12 = vpop.f32.mrf.mxu1 }
 0x7e9   : > { %v1381_v13 = vpop.xlane.xlu1 %1380 }
 0x7ea   : > { %v1382_v14 = vmul.f32 0.03125, %v1381_v13 }
 0x7ec   : > { %v1383_v15 = vsub.f32 %v1376_v8, %v1382_v14 }
 0x7ee   : > { %v1384_v16 = vmul.f32 %v1383_v15, %v1383_v15 }
 0x7f0   : > { %v1385_v17 = vsel %vm728_vm1, %v1384_v16, 0.0 }
 0x7f1   : > { %1386 = vadd.xlane.f32.xlu0 %v1385_v17 }
 0x87a   : > { %v1387_v1 = vpop.xlane.xlu0 %1386 }
 0x87b   : > { %v1388_v20 = vmul.f32 0.03125, %v1387_v1 }
 0x87d   : > { %v1389_v21 = vadd.f32 1e-06, %v1388_v20 }
 0x87f   : > { %2143 = vrsqrt.f32 %v1389_v21 }
 0x88c   : > { %v2144_v22 = vpop.eup %2143 }
 0x88d   : > { %v1391_v24 = vmul.f32 %v2144_v22, %v1383_v15 }
 0x88f   : > { %v1398_v26 = vmul.f32 %v1848_v23, %v1391_v24 }
 0x891   : > { %v1405_v27 = vadd.f32 %v1849_v25, %v1398_v26 }
 0x893   : > { %v1406_v28 = vpack.c.bf16 %v1405_v27, %v1405_v27 }
 0x895   : > { %1967 = vmatmul.mubr.msk.bf16.vlgmr.msra.gmra.mxu0 %vm728_vm1, %v1406_v28 }
 0x955   : > { %v1467_v34 = vpop.f32.mrf.mxu0 }
 0x956   : > { %v1468_v35 = vadd.f32 %v1850_v33, %v1467_v34 }
 0x957   : > { %v1968_v36 = vpop.f32.mrf.mxu0 }
 0x958   : > { %v1474_v37 = vmul.f32 0.70710677, %v1468_v35  ;;  %v1473_v41 = vmul.f32 0.5, %v1468_v35 }
 0x959   : > { %v1470_v38 = vpop.f32.mrf.mxu0 }
 0x95a   : > { %2145 = verf.f32 %v1474_v37 }
 0x95b   : > { %v1969_v39 = vpop.f32.mrf.mxu0 }
 0x967   : > { %v2146_v40 = vpop.eup %2145 }
 0x968   : > { %v1476_v42 = vadd.f32 1.0, %v2146_v40 }
 0x96a   : > { %v1477_v43 = vmul.f32 %v1476_v42, %v1473_v41 }
 0x96c   : > { %v1478_v9 = vpack.c.bf16 %v1477_v43, %v1477_v43 }
 0x96e   : > { %1979 = vmatmul.mubr.msk.bf16.vlgmr.msra.gmra.mxu1 %vm1518_vm9, %v1478_v9 }
 0xa2e   : > { %v1556_v45 = vpop.f32.mrf.mxu1 }
 0xa2f   : > { %v1557_v46 = vadd.f32 %v1854_v44, %v1556_v45 }
 0xa30   : > { %v1980_v47 = vpop.f32.mrf.mxu1 }
 0xa31   : > { %v1562_v48 = vadd.f32 %v1557_v46, %v1376_v8 }
 0xa32   : > { %v1559_v49 = vpop.f32.mrf.mxu1 }
 0xa33   : > { %1563 = vst.msk [vmem:[%s2760_s16] sm:$0xff] %vm728_vm1, %v1562_v48 }
 0xa34   : > { %v1981_v50 = vpop.f32.mrf.mxu1 }
 0xa35   : > { %2272 = shalt.err (!%p2269_p6)
}
 0xa36   : > { %s2273_s16 = scalar_lea.hbm %s2898_s11, 128  ;;  %s2277_s28 = scalar_lea.hbm %s3065_s1, 256 }
 0xa37   : > { %p2274_p8 = scmp.ne.s32.totalorder %s2898_s11, %s2273_s16  ;;  %p2278_p9 = scmp.lt.s32.totalorder %s2898_s11, %s3065_s1 }
 0xa38   : > { %p2279_p2 = scmp.lt.s32.totalorder %s2277_s28, %s2273_s16 }
 0xa39   : > { %p2275_p13 = pnand %p2274_p8, %p3066_p1 }
 0xa3a   : > { %p2280_p10 = por %p2279_p2, %p2278_p9 }
 0xa3b   : > { %p2276_p4 = pneg %p2275_p13 }
 0xa3d   : > { %p2281_p5 = pnand %p2280_p10, %p2276_p4 }
 0xa3f   : > { %2284 = shalt.err (!%p2281_p5)
}
 0xa40   : > { %1990 = dma.vmem_to_hbm [thread:$0]  (%p3066_p1), %s2900_s5, 128, %s2898_s11, %s1565_s25  }
 0xa41 PF: > { %s3067_s0 = sld [smem:[#allocation18_spill]]  ;;  %p2010_p7 = scmp.ge.s32.totalorder %s2387_s18, 2 }
 0xa42   : > { %p3068_p12 = scmp.ne.s32.totalorder %s3030_s13, 0 }
 0xa44   : > { %p2006_p11 = pnand %p2010_p7, %p3068_p12 }
 0xa46   : > { %p2007_p0 = pneg %p2006_p11 }
 0xa47   : > { %s1590_s23 = sand.u32 1, %s3067_s0  }
 0xa48   : > { %s1591_s3 = scalar_lea.sflag [#allocation6], %s1590_s23 }
 0xa49   : > { %2342 = dma.done.wait (%p2007_p0), %s1591_s3, 128  }
 0xa4a   : > { %2344 = vsyncadd (%p2007_p0), %s1591_s3, 4294967168  ;;  %s35_s18 = sadd.s32 1, %s2387_s18   ;;  %s3069_s21 = sld [smem:[#allocation17_spill]] }
 0xa4b   : > { %p32_p3 = scmp.ge.s32.totalorder %s35_s18, 6   ;;  %s3070_s27 = sld [smem:[#allocation27_spill]] }
 0xa4c   : > { %s3071_s28 = sld [smem:[#allocation19_spill]]  ;;  %s3078_s25 = smov %s2351_s26 }
 0xa4d   : > { %s3072_s29 = sld [smem:[#allocation20_spill]] }
 0xa4e   : > { %s3073_s30 = sld [smem:[#allocation29_spill]]  ;;  %34 = sbr.rel (!%p32_p3) target bundleno = 28 (0x1c), region = 185 }
 0xa4f   : > { %s3074_s14 = sld [smem:[#allocation23_spill]] }
 0xa50   : > { %s3075_s15 = sld [smem:[#allocation24_spill]]  ;;  %s3079_s26 = smov %s3069_s21 }
 0xa51   : > { %s3076_s16 = sld [smem:[#allocation25_spill]] }
 0xa52   : > { %s3077_s17 = sld [smem:[#allocation28_spill]] }
 0xa53   :  { %1596 = vsyncpa [#allocation5], 1 }
 0xa54   :  { %1598 = vsyncpa [#allocation5 + $0x1], 1 }
 0xa55   :  { %1599 = vsyncpa [#allocation8], 1 }
 0xa56   :  { %1601 = vsyncpa [#allocation8 + $0x1], 1 }
 0xa57   :  { %1602 = vsyncpa [#allocation11], 1 }
 0xa58   :  { %1604 = vsyncpa [#allocation11 + $0x1], 1 }
 0xa59   :  { %1605 = vsyncpa [#allocation6], 1 }
 0xa5a   :  { %1607 = vsyncpa [#allocation6 + $0x1], 1 }

</bundles_post_ra>
